<compile_context>
chip_gen: v5e
topology: v5e:2x2
jax: 0.10.0
libtpu: 0.0.40
codegen_flags: <defaults>
</compile_context>

<pallas_src>
import math

import jax
import jax.numpy as jnp
from jax import lax
from jax.experimental import pallas as pl
from jax.experimental.pallas import tpu as pltpu


def _pick_tile(T: int) -> int:
    """Largest of {256,128,64,32,16,8} that divides T (256-aligned is optimal
    for v6e/v7x MXU, 128 for v5e); falls back to the full sequence length."""
    for t in (256, 128, 64, 32, 16, 8):
        if t <= T and T % t == 0:
            return t
    return T


def make_attention_kernel(*, n_head: int, head_dim: int, tq: int, tk: int,
                          compute_dtype):
    """Kernel body closed over static head / tile configuration."""
    C = n_head * head_dim
    scale = 1.0 / math.sqrt(head_dim)
    neg = -1e30  # large finite negative: no inf-inf NaN risk in online softmax

    def kernel(xq_ref, xkv_ref,
               wq_ref, bq_ref, wk_ref, bk_ref, wv_ref, bv_ref,
               wp_ref, bp_ref,
               o_ref,
               q_sc, m_sc, l_sc, acc_sc):
        # xq_ref : (1, tq, C)   Q rows of this batch element
        # xkv_ref: (1, tk, C)   KV rows of this batch element
        # wq/wk/wv_ref: (n_head, C, hd) bf16   bq/bk/bv_ref: (n_head, 1, hd) f32
        # wp_ref : (n_head, hd, C) bf16        bp_ref: (1, C) f32
        # o_ref  : (1, tq, C)
        # q_sc   : (n_head, tq, hd) f32   cached scaled Q (computed once per Q tile)
        # m_sc/l_sc: (n_head, tq, 1) f32  running max / denominator
        # acc_sc : (n_head, tq, hd) f32   unnormalized output accumulator
        qi = pl.program_id(1)
        ki = pl.program_id(2)
        nk = pl.num_programs(2)
        q_start = qi * tq
        k_start = ki * tk

        # --- per-Q-tile init (ki == 0 is never causally skipped) -------------
        @pl.when(ki == 0)
        def _init():
            xq = xq_ref[0].astype(compute_dtype)                    # (tq, C)
            for h in range(n_head):                                 # static unroll
                qh = jnp.dot(xq, wq_ref[h],
                             preferred_element_type=jnp.float32) + bq_ref[h]
                q_sc[h] = qh * scale           # fold 1/sqrt(hd) into q, not (tq,tk)
            m_sc[...] = jnp.full_like(m_sc, neg)
            l_sc[...] = jnp.zeros_like(l_sc)
            acc_sc[...] = jnp.zeros_like(acc_sc)

        # --- online-softmax update; skip KV tiles entirely in the future -----
        @pl.when(k_start <= q_start + (tq - 1))
        def _update():
            xkv = xkv_ref[0].astype(compute_dtype)                  # (tk, C)
            q_pos = q_start + lax.broadcasted_iota(jnp.int32, (tq, tk), 0)
            k_pos = k_start + lax.broadcasted_iota(jnp.int32, (tq, tk), 1)
            causal = q_pos >= k_pos

            for h in range(n_head):                                 # static unroll
                kh = jnp.dot(xkv, wk_ref[h],
                             preferred_element_type=jnp.float32) + bk_ref[h]
                vh = jnp.dot(xkv, wv_ref[h],
                             preferred_element_type=jnp.float32) + bv_ref[h]

                # q @ k^T as a contraction over the last dim of both operands
                # (no explicit transpose of kh).
                s = lax.dot_general(
                    q_sc[h].astype(compute_dtype), kh.astype(compute_dtype),
                    dimension_numbers=(((1,), (1,)), ((), ())),
                    preferred_element_type=jnp.float32)             # (tq, tk)
                s = jnp.where(causal, s, neg)

                m_prev = m_sc[h]                                    # (tq, 1)
                m_new = jnp.maximum(m_prev, jnp.max(s, axis=-1, keepdims=True))
                alpha = jnp.exp(m_prev - m_new)
                p = jnp.exp(s - m_new)                              # (tq, tk)
                l_sc[h] = alpha * l_sc[h] + jnp.sum(p, axis=-1, keepdims=True)
                acc_sc[h] = alpha * acc_sc[h] + jnp.dot(
                    p.astype(compute_dtype), vh.astype(compute_dtype),
                    preferred_element_type=jnp.float32)
                m_sc[h] = m_new

        # --- finalize: normalize and accumulate each head into the output ----
        # projection (no lane-direction concatenate of heads).
        @pl.when(ki == nk - 1)
        def _finalize():
            out = jnp.zeros((tq, C), jnp.float32)
            for h in range(n_head):
                o_h = acc_sc[h] * pl.reciprocal(l_sc[h], approx=True)  # (tq, hd)
                out = out + jnp.dot(o_h.astype(compute_dtype), wp_ref[h],
                                    preferred_element_type=jnp.float32)
            o_ref[0] = (out + bp_ref[...]).astype(o_ref.dtype)

    return kernel


def causal_self_attention(x, w_qkv, b_qkv, w_proj, b_proj, *, n_head,
                          q_tile=None, kv_tile=None,
                          compute_dtype=jnp.bfloat16):
    """x: (B, T, C).  Weights stored [in_features, out_features].

    Returns (B, T, C).  Matmuls run with `compute_dtype` (bf16 by default)
    inputs and f32 accumulation; softmax math is f32.
    """
    B, T, C = x.shape
    assert C % n_head == 0
    hd = C // n_head

    tq = q_tile or _pick_tile(T)
    tk = kv_tile or _pick_tile(T)
    assert T % tq == 0 and T % tk == 0
    nq, nk = T // tq, T // tk

    # --- trace-time weight prep: per-head layout so in-kernel head slicing is
    # along the leading axis (cheap), never along the 128-lane axis; bf16 for
    # the MXU, biases kept in f32.
    w_q = w_qkv[:, 0 * C:1 * C]
    w_k = w_qkv[:, 1 * C:2 * C]
    w_v = w_qkv[:, 2 * C:3 * C]

    def per_head_in(w):  # (C, C) -> (n_head, C, hd)
        return jnp.transpose(w.reshape(C, n_head, hd), (1, 0, 2)).astype(compute_dtype)

    wq_h = per_head_in(w_q)
    wk_h = per_head_in(w_k)
    wv_h = per_head_in(w_v)
    bq_h = b_qkv[0 * C:1 * C].reshape(n_head, 1, hd).astype(jnp.float32)
    bk_h = b_qkv[1 * C:2 * C].reshape(n_head, 1, hd).astype(jnp.float32)
    bv_h = b_qkv[2 * C:3 * C].reshape(n_head, 1, hd).astype(jnp.float32)
    wp_h = w_proj.reshape(n_head, hd, C).astype(compute_dtype)  # rows h*hd:(h+1)*hd
    bp = b_proj.reshape(1, C).astype(jnp.float32)

    kernel = make_attention_kernel(n_head=n_head, head_dim=hd, tq=tq, tk=tk,
                                   compute_dtype=compute_dtype)

    # Weights use constant index maps -> fetched once and resident across the
    # grid.  (Single-buffering them via pipeline_mode would save a further
    # weight-sized VMEM copy; left at the default for portability.)
    const3 = lambda b, qi, ki: (0, 0, 0)
    const2 = lambda b, qi, ki: (0, 0)

    return pl.pallas_call(
        kernel,
        out_shape=jax.ShapeDtypeStruct((B, T, C), x.dtype),
        grid_spec=pltpu.PrefetchScalarGridSpec(
            num_scalar_prefetch=0,
            grid=(B, nq, nk),                       # KV (reduction) axis last
            in_specs=[
                pl.BlockSpec((1, tq, C), lambda b, qi, ki: (b, qi, 0)),  # x (Q rows)
                pl.BlockSpec((1, tk, C), lambda b, qi, ki: (b, ki, 0)),  # x (KV rows)
                pl.BlockSpec((n_head, C, hd), const3),                   # W_q
                pl.BlockSpec((n_head, 1, hd), const3),                   # b_q
                pl.BlockSpec((n_head, C, hd), const3),                   # W_k
                pl.BlockSpec((n_head, 1, hd), const3),                   # b_k
                pl.BlockSpec((n_head, C, hd), const3),                   # W_v
                pl.BlockSpec((n_head, 1, hd), const3),                   # b_v
                pl.BlockSpec((n_head, hd, C), const3),                   # W_proj
                pl.BlockSpec((1, C), const2),                            # b_proj
            ],
            out_specs=pl.BlockSpec((1, tq, C), lambda b, qi, ki: (b, qi, 0)),
            scratch_shapes=[
                pltpu.VMEM((n_head, tq, hd), jnp.float32),  # cached scaled Q
                pltpu.VMEM((n_head, tq, 1), jnp.float32),   # running max m
                pltpu.VMEM((n_head, tq, 1), jnp.float32),   # running denom l
                pltpu.VMEM((n_head, tq, hd), jnp.float32),  # unnormalized acc
            ],
        ),
        compiler_params=pltpu.CompilerParams(
            # batch and Q-row tiles parallel (megacore / dual-TC sharding);
            # KV axis is the accumulation axis.
            dimension_semantics=("parallel", "parallel", "arbitrary")),
    )(x, x, wq_h, bq_h, wk_h, bk_h, wv_h, bv_h, wp_h, bp)


def reference_attention(x, w_qkv, b_qkv, w_proj, b_proj, *, n_head,
                        compute_dtype=jnp.bfloat16):
    """Pure-JAX reference mirroring the PyTorch forward (eval mode) with the
    kernel's precision policy (compute_dtype matmul inputs, f32 accumulate)."""
    B, T, C = x.shape
    hd = C // n_head

    def mm(a, b):
        return jnp.dot(a.astype(compute_dtype), b.astype(compute_dtype),
                       preferred_element_type=jnp.float32)

    qkv = mm(x, w_qkv) + b_qkv
    q, k, v = jnp.split(qkv, 3, axis=-1)
    q = (q * (1.0 / math.sqrt(hd))).reshape(B, T, n_head, hd).transpose(0, 2, 1, 3)
    k = k.reshape(B, T, n_head, hd).transpose(0, 2, 1, 3)
    v = v.reshape(B, T, n_head, hd).transpose(0, 2, 1, 3)
    att = jnp.einsum('bhqd,bhkd->bhqk', q.astype(compute_dtype),
                     k.astype(compute_dtype),
                     preferred_element_type=jnp.float32)
    mask = jnp.tril(jnp.ones((T, T), dtype=bool))
    att = jnp.where(mask[None, None], att, -jnp.inf)
    att = jax.nn.softmax(att, axis=-1)
    y = jnp.einsum('bhqk,bhkd->bhqd', att.astype(compute_dtype),
                   v.astype(compute_dtype),
                   preferred_element_type=jnp.float32)
    y = y.transpose(0, 2, 1, 3).reshape(B, T, C)
    return mm(y, w_proj) + b_proj


if __name__ == "__main__":
    # Config: block_size >= T, n_embd=32, n_head=4  ->  head_dim=8
    B, T, C, n_head = 2, 8, 32, 4

    key = jax.random.PRNGKey(0)
    kx, k1, k2, k3, k4 = jax.random.split(key, 5)

    x = jax.random.normal(kx, (B, T, C), dtype=jnp.float32)

    # Deterministic parameter init (scaled normal, roughly Linear-like).
    w_qkv = jax.random.normal(k1, (C, 3 * C), dtype=jnp.float32) * (1.0 / math.sqrt(C))
    b_qkv = jax.random.normal(k2, (3 * C,), dtype=jnp.float32) * 0.02
    w_proj = jax.random.normal(k3, (C, C), dtype=jnp.float32) * (1.0 / math.sqrt(C))
    b_proj = jax.random.normal(k4, (C,), dtype=jnp.float32) * 0.02

    out = causal_self_attention(x, w_qkv, b_qkv, w_proj, b_proj, n_head=n_head)
    out = jax.block_until_ready(out)

    ref = reference_attention(x, w_qkv, b_qkv, w_proj, b_proj, n_head=n_head)
    assert out.shape == (B, T, C)
    # Tolerance accounts for online vs. direct softmax ordering, bf16 rounding
    # of the unnormalized attention weights and the approx reciprocal.
    assert jnp.allclose(out, ref, atol=2e-2, rtol=2e-2), "mismatch vs reference"

    print("KERNEL_OK")
</pallas_src>

<mosaic_0001>
module attributes {stable_mosaic.version = 11 : i64} {
  func.func @kernel(%arg0: i32, %arg1: i32, %arg2: i32, %arg3: memref<1x8x32xf32, #tpu.memory_space<vmem>>, %arg4: memref<1x8x32xf32, #tpu.memory_space<vmem>>, %arg5: memref<4x32x8xbf16, #tpu.memory_space<vmem>>, %arg6: memref<4x1x8xf32, #tpu.memory_space<vmem>>, %arg7: memref<4x32x8xbf16, #tpu.memory_space<vmem>>, %arg8: memref<4x1x8xf32, #tpu.memory_space<vmem>>, %arg9: memref<4x32x8xbf16, #tpu.memory_space<vmem>>, %arg10: memref<4x1x8xf32, #tpu.memory_space<vmem>>, %arg11: memref<4x8x32xbf16, #tpu.memory_space<vmem>>, %arg12: memref<1x32xf32, #tpu.memory_space<vmem>>, %arg13: memref<1x8x32xf32, #tpu.memory_space<vmem>>, %arg14: memref<4x8x8xf32, #tpu.memory_space<vmem>>, %arg15: memref<4x8x1xf32, #tpu.memory_space<vmem>>, %arg16: memref<4x8x1xf32, #tpu.memory_space<vmem>>, %arg17: memref<4x8x8xf32, #tpu.memory_space<vmem>>) attributes {dimension_semantics = [#tpu.dimension_semantics<parallel>, #tpu.dimension_semantics<parallel>, #tpu.dimension_semantics<arbitrary>], iteration_bounds = array<i64: 2, 1, 1>, scalar_prefetch = 0 : i64, scratch_operands = 4 : i64, tpu.core_type = #tpu.core_type<tc>, window_params = [{transform_indices = @transform_0, window_bounds = array<i64: 1, 8, 32>}, {transform_indices = @transform_1, window_bounds = array<i64: 1, 8, 32>}, {pipeline_mode = #tpu.pipeline_mode<synchronous>, transform_indices = @transform_2, window_bounds = array<i64: 4, 32, 8>}, {pipeline_mode = #tpu.pipeline_mode<synchronous>, transform_indices = @transform_3, window_bounds = array<i64: 4, 1, 8>}, {pipeline_mode = #tpu.pipeline_mode<synchronous>, transform_indices = @transform_4, window_bounds = array<i64: 4, 32, 8>}, {pipeline_mode = #tpu.pipeline_mode<synchronous>, transform_indices = @transform_5, window_bounds = array<i64: 4, 1, 8>}, {pipeline_mode = #tpu.pipeline_mode<synchronous>, transform_indices = @transform_6, window_bounds = array<i64: 4, 32, 8>}, {pipeline_mode = #tpu.pipeline_mode<synchronous>, transform_indices = @transform_7, window_bounds = array<i64: 4, 1, 8>}, {pipeline_mode = #tpu.pipeline_mode<synchronous>, transform_indices = @transform_8, window_bounds = array<i64: 4, 8, 32>}, {pipeline_mode = #tpu.pipeline_mode<synchronous>, transform_indices = @transform_9, window_bounds = array<i64: 1, 32>}, {transform_indices = @transform_10, window_bounds = array<i64: 1, 8, 32>}]} {
    %c8_i32 = arith.constant 8 : i32
    %0 = arith.muli %arg1, %c8_i32 : i32
    %c8_i32_0 = arith.constant 8 : i32
    %1 = arith.muli %arg2, %c8_i32_0 : i32
    %c0_i32 = arith.constant 0 : i32
    %2 = arith.cmpi eq, %arg2, %c0_i32 : i32
    %3 = arith.extui %2 : i1 to i32
    %c0_i32_1 = arith.constant 0 : i32
    %4 = arith.cmpi ne, %3, %c0_i32_1 : i32
    scf.if %4 {
      %c0 = arith.constant 0 : index
      %c0_5 = arith.constant 0 : index
      %c0_6 = arith.constant 0 : index
      %12 = vector.load %arg3[%c0, %c0_5, %c0_6] : memref<1x8x32xf32, #tpu.memory_space<vmem>>, vector<1x8x32xf32>
      %13 = vector.shape_cast %12 : vector<1x8x32xf32> to vector<8x32xf32>
      %14 = arith.truncf %13 : vector<8x32xf32> to vector<8x32xbf16>
      %c0_7 = arith.constant 0 : index
      %c0_8 = arith.constant 0 : index
      %c0_9 = arith.constant 0 : index
      %15 = vector.load %arg5[%c0_7, %c0_8, %c0_9] : memref<4x32x8xbf16, #tpu.memory_space<vmem>>, vector<1x32x8xbf16>
      %16 = vector.shape_cast %15 : vector<1x32x8xbf16> to vector<32x8xbf16>
      %cst = arith.constant dense<0.000000e+00> : vector<8x8xf32>
      %17 = tpu.matmul %14, %16, %cst {dimension_numbers = #tpu.dot_dimension_numbers<[1], [0], [0], [1], [0, 0, 1, 1], [], []>} : vector<8x32xbf16>, vector<32x8xbf16>, vector<8x8xf32> -> vector<8x8xf32>
      %c0_10 = arith.constant 0 : index
      %c0_11 = arith.constant 0 : index
      %c0_12 = arith.constant 0 : index
      %18 = vector.load %arg6[%c0_10, %c0_11, %c0_12] : memref<4x1x8xf32, #tpu.memory_space<vmem>>, vector<1x1x8xf32>
      %19 = vector.shape_cast %18 : vector<1x1x8xf32> to vector<1x8xf32>
      %20 = vector.broadcast %19 : vector<1x8xf32> to vector<8x8xf32>
      %21 = arith.addf %17, %20 : vector<8x8xf32>
      %cst_13 = arith.constant 0.353553385 : f32
      %22 = vector.broadcast %cst_13 : f32 to vector<8x8xf32>
      %23 = arith.mulf %21, %22 : vector<8x8xf32>
      %c0_14 = arith.constant 0 : index
      %c0_15 = arith.constant 0 : index
      %c0_16 = arith.constant 0 : index
      %24 = vector.load %arg14[%c0_14, %c0_15, %c0_16] : memref<4x8x8xf32, #tpu.memory_space<vmem>>, vector<1x8x8xf32>
      %25 = vector.shape_cast %24 : vector<1x8x8xf32> to vector<8x8xf32>
      %26 = vector.shape_cast %23 : vector<8x8xf32> to vector<1x8x8xf32>
      tpu.vector_store %arg14[%c0_14, %c0_15, %c0_16], %26 {strides = array<i32>} : memref<4x8x8xf32, #tpu.memory_space<vmem>>, vector<1x8x8xf32>,
      %c1 = arith.constant 1 : index
      %c0_17 = arith.constant 0 : index
      %c0_18 = arith.constant 0 : index
      %27 = vector.load %arg5[%c1, %c0_17, %c0_18] : memref<4x32x8xbf16, #tpu.memory_space<vmem>>, vector<1x32x8xbf16>
      %28 = vector.shape_cast %27 : vector<1x32x8xbf16> to vector<32x8xbf16>
      %cst_19 = arith.constant dense<0.000000e+00> : vector<8x8xf32>
      %29 = tpu.matmul %14, %28, %cst_19 {dimension_numbers = #tpu.dot_dimension_numbers<[1], [0], [0], [1], [0, 0, 1, 1], [], []>} : vector<8x32xbf16>, vector<32x8xbf16>, vector<8x8xf32> -> vector<8x8xf32>
      %c1_20 = arith.constant 1 : index
      %c0_21 = arith.constant 0 : index
      %c0_22 = arith.constant 0 : index
      %30 = vector.load %arg6[%c1_20, %c0_21, %c0_22] : memref<4x1x8xf32, #tpu.memory_space<vmem>>, vector<1x1x8xf32>
      %31 = vector.shape_cast %30 : vector<1x1x8xf32> to vector<1x8xf32>
      %32 = vector.broadcast %31 : vector<1x8xf32> to vector<8x8xf32>
      %33 = arith.addf %29, %32 : vector<8x8xf32>
      %cst_23 = arith.constant 0.353553385 : f32
      %34 = vector.broadcast %cst_23 : f32 to vector<8x8xf32>
      %35 = arith.mulf %33, %34 : vector<8x8xf32>
      %c1_24 = arith.constant 1 : index
      %c0_25 = arith.constant 0 : index
      %c0_26 = arith.constant 0 : index
      %36 = vector.load %arg14[%c1_24, %c0_25, %c0_26] : memref<4x8x8xf32, #tpu.memory_space<vmem>>, vector<1x8x8xf32>
      %37 = vector.shape_cast %36 : vector<1x8x8xf32> to vector<8x8xf32>
      %38 = vector.shape_cast %35 : vector<8x8xf32> to vector<1x8x8xf32>
      tpu.vector_store %arg14[%c1_24, %c0_25, %c0_26], %38 {strides = array<i32>} : memref<4x8x8xf32, #tpu.memory_space<vmem>>, vector<1x8x8xf32>,
      %c2 = arith.constant 2 : index
      %c0_27 = arith.constant 0 : index
      %c0_28 = arith.constant 0 : index
      %39 = vector.load %arg5[%c2, %c0_27, %c0_28] : memref<4x32x8xbf16, #tpu.memory_space<vmem>>, vector<1x32x8xbf16>
      %40 = vector.shape_cast %39 : vector<1x32x8xbf16> to vector<32x8xbf16>
      %cst_29 = arith.constant dense<0.000000e+00> : vector<8x8xf32>
      %41 = tpu.matmul %14, %40, %cst_29 {dimension_numbers = #tpu.dot_dimension_numbers<[1], [0], [0], [1], [0, 0, 1, 1], [], []>} : vector<8x32xbf16>, vector<32x8xbf16>, vector<8x8xf32> -> vector<8x8xf32>
      %c2_30 = arith.constant 2 : index
      %c0_31 = arith.constant 0 : index
      %c0_32 = arith.constant 0 : index
      %42 = vector.load %arg6[%c2_30, %c0_31, %c0_32] : memref<4x1x8xf32, #tpu.memory_space<vmem>>, vector<1x1x8xf32>
      %43 = vector.shape_cast %42 : vector<1x1x8xf32> to vector<1x8xf32>
      %44 = vector.broadcast %43 : vector<1x8xf32> to vector<8x8xf32>
      %45 = arith.addf %41, %44 : vector<8x8xf32>
      %cst_33 = arith.constant 0.353553385 : f32
      %46 = vector.broadcast %cst_33 : f32 to vector<8x8xf32>
      %47 = arith.mulf %45, %46 : vector<8x8xf32>
      %c2_34 = arith.constant 2 : index
      %c0_35 = arith.constant 0 : index
      %c0_36 = arith.constant 0 : index
      %48 = vector.load %arg14[%c2_34, %c0_35, %c0_36] : memref<4x8x8xf32, #tpu.memory_space<vmem>>, vector<1x8x8xf32>
      %49 = vector.shape_cast %48 : vector<1x8x8xf32> to vector<8x8xf32>
      %50 = vector.shape_cast %47 : vector<8x8xf32> to vector<1x8x8xf32>
      tpu.vector_store %arg14[%c2_34, %c0_35, %c0_36], %50 {strides = array<i32>} : memref<4x8x8xf32, #tpu.memory_space<vmem>>, vector<1x8x8xf32>,
      %c3 = arith.constant 3 : index
      %c0_37 = arith.constant 0 : index
      %c0_38 = arith.constant 0 : index
      %51 = vector.load %arg5[%c3, %c0_37, %c0_38] : memref<4x32x8xbf16, #tpu.memory_space<vmem>>, vector<1x32x8xbf16>
      %52 = vector.shape_cast %51 : vector<1x32x8xbf16> to vector<32x8xbf16>
      %cst_39 = arith.constant dense<0.000000e+00> : vector<8x8xf32>
      %53 = tpu.matmul %14, %52, %cst_39 {dimension_numbers = #tpu.dot_dimension_numbers<[1], [0], [0], [1], [0, 0, 1, 1], [], []>} : vector<8x32xbf16>, vector<32x8xbf16>, vector<8x8xf32> -> vector<8x8xf32>
      %c3_40 = arith.constant 3 : index
      %c0_41 = arith.constant 0 : index
      %c0_42 = arith.constant 0 : index
      %54 = vector.load %arg6[%c3_40, %c0_41, %c0_42] : memref<4x1x8xf32, #tpu.memory_space<vmem>>, vector<1x1x8xf32>
      %55 = vector.shape_cast %54 : vector<1x1x8xf32> to vector<1x8xf32>
      %56 = vector.broadcast %55 : vector<1x8xf32> to vector<8x8xf32>
      %57 = arith.addf %53, %56 : vector<8x8xf32>
      %cst_43 = arith.constant 0.353553385 : f32
      %58 = vector.broadcast %cst_43 : f32 to vector<8x8xf32>
      %59 = arith.mulf %57, %58 : vector<8x8xf32>
      %c3_44 = arith.constant 3 : index
      %c0_45 = arith.constant 0 : index
      %c0_46 = arith.constant 0 : index
      %60 = vector.load %arg14[%c3_44, %c0_45, %c0_46] : memref<4x8x8xf32, #tpu.memory_space<vmem>>, vector<1x8x8xf32>
      %61 = vector.shape_cast %60 : vector<1x8x8xf32> to vector<8x8xf32>
      %62 = vector.shape_cast %59 : vector<8x8xf32> to vector<1x8x8xf32>
      tpu.vector_store %arg14[%c3_44, %c0_45, %c0_46], %62 {strides = array<i32>} : memref<4x8x8xf32, #tpu.memory_space<vmem>>, vector<1x8x8xf32>,
      %cst_47 = arith.constant -1.000000e+30 : f32
      %63 = vector.broadcast %cst_47 : f32 to vector<4x8x1xf32>
      %c0_48 = arith.constant 0 : index
      %c0_49 = arith.constant 0 : index
      %c0_50 = arith.constant 0 : index
      %64 = vector.load %arg15[%c0_48, %c0_49, %c0_50] : memref<4x8x1xf32, #tpu.memory_space<vmem>>, vector<4x8x1xf32>
      tpu.vector_store %arg15[%c0_48, %c0_49, %c0_50], %63 {strides = array<i32>} : memref<4x8x1xf32, #tpu.memory_space<vmem>>, vector<4x8x1xf32>,
      %cst_51 = arith.constant 0.000000e+00 : f32
      %65 = vector.broadcast %cst_51 : f32 to vector<4x8x1xf32>
      %c0_52 = arith.constant 0 : index
      %c0_53 = arith.constant 0 : index
      %c0_54 = arith.constant 0 : index
      %66 = vector.load %arg16[%c0_52, %c0_53, %c0_54] : memref<4x8x1xf32, #tpu.memory_space<vmem>>, vector<4x8x1xf32>
      tpu.vector_store %arg16[%c0_52, %c0_53, %c0_54], %65 {strides = array<i32>} : memref<4x8x1xf32, #tpu.memory_space<vmem>>, vector<4x8x1xf32>,
      %cst_55 = arith.constant 0.000000e+00 : f32
      %67 = vector.broadcast %cst_55 : f32 to vector<4x8x8xf32>
      %c0_56 = arith.constant 0 : index
      %c0_57 = arith.constant 0 : index
      %c0_58 = arith.constant 0 : index
      %68 = vector.load %arg17[%c0_56, %c0_57, %c0_58] : memref<4x8x8xf32, #tpu.memory_space<vmem>>, vector<4x8x8xf32>
      tpu.vector_store %arg17[%c0_56, %c0_57, %c0_58], %67 {strides = array<i32>} : memref<4x8x8xf32, #tpu.memory_space<vmem>>, vector<4x8x8xf32>,
    } else {
    }
    %c7_i32 = arith.constant 7 : i32
    %5 = arith.addi %0, %c7_i32 : i32
    %6 = arith.cmpi sle, %1, %5 : i32
    %7 = arith.extui %6 : i1 to i32
    %c0_i32_2 = arith.constant 0 : i32
    %8 = arith.cmpi ne, %7, %c0_i32_2 : i32
    scf.if %8 {
      %c0 = arith.constant 0 : index
      %c0_5 = arith.constant 0 : index
      %c0_6 = arith.constant 0 : index
      %12 = vector.load %arg4[%c0, %c0_5, %c0_6] : memref<1x8x32xf32, #tpu.memory_space<vmem>>, vector<1x8x32xf32>
      %13 = vector.shape_cast %12 : vector<1x8x32xf32> to vector<8x32xf32>
      %14 = arith.truncf %13 : vector<8x32xf32> to vector<8x32xbf16>
      %15 = tpu.iota {dimensions = array<i32: 0>} : vector<8x8xi32>
      %16 = vector.broadcast %0 : i32 to vector<8x8xi32>
      %17 = arith.addi %16, %15 : vector<8x8xi32>
      %18 = tpu.iota {dimensions = array<i32: 1>} : vector<8x8xi32>
      %19 = vector.broadcast %1 : i32 to vector<8x8xi32>
      %20 = arith.addi %19, %18 : vector<8x8xi32>
      %21 = arith.cmpi sge, %17, %20 : vector<8x8xi32>
      %c0_7 = arith.constant 0 : index
      %c0_8 = arith.constant 0 : index
      %c0_9 = arith.constant 0 : index
      %22 = vector.load %arg7[%c0_7, %c0_8, %c0_9] : memref<4x32x8xbf16, #tpu.memory_space<vmem>>, vector<1x32x8xbf16>
      %23 = vector.shape_cast %22 : vector<1x32x8xbf16> to vector<32x8xbf16>
      %cst = arith.constant dense<0.000000e+00> : vector<8x8xf32>
      %24 = tpu.matmul %14, %23, %cst {dimension_numbers = #tpu.dot_dimension_numbers<[1], [0], [0], [1], [0, 0, 1, 1], [], []>} : vector<8x32xbf16>, vector<32x8xbf16>, vector<8x8xf32> -> vector<8x8xf32>
      %c0_10 = arith.constant 0 : index
      %c0_11 = arith.constant 0 : index
      %c0_12 = arith.constant 0 : index
      %25 = vector.load %arg8[%c0_10, %c0_11, %c0_12] : memref<4x1x8xf32, #tpu.memory_space<vmem>>, vector<1x1x8xf32>
      %26 = vector.shape_cast %25 : vector<1x1x8xf32> to vector<1x8xf32>
      %27 = vector.broadcast %26 : vector<1x8xf32> to vector<8x8xf32>
      %28 = arith.addf %24, %27 : vector<8x8xf32>
      %c0_13 = arith.constant 0 : index
      %c0_14 = arith.constant 0 : index
      %c0_15 = arith.constant 0 : index
      %29 = vector.load %arg9[%c0_13, %c0_14, %c0_15] : memref<4x32x8xbf16, #tpu.memory_space<vmem>>, vector<1x32x8xbf16>
      %30 = vector.shape_cast %29 : vector<1x32x8xbf16> to vector<32x8xbf16>
      %cst_16 = arith.constant dense<0.000000e+00> : vector<8x8xf32>
      %31 = tpu.matmul %14, %30, %cst_16 {dimension_numbers = #tpu.dot_dimension_numbers<[1], [0], [0], [1], [0, 0, 1, 1], [], []>} : vector<8x32xbf16>, vector<32x8xbf16>, vector<8x8xf32> -> vector<8x8xf32>
      %c0_17 = arith.constant 0 : index
      %c0_18 = arith.constant 0 : index
      %c0_19 = arith.constant 0 : index
      %32 = vector.load %arg10[%c0_17, %c0_18, %c0_19] : memref<4x1x8xf32, #tpu.memory_space<vmem>>, vector<1x1x8xf32>
      %33 = vector.shape_cast %32 : vector<1x1x8xf32> to vector<1x8xf32>
      %34 = vector.broadcast %33 : vector<1x8xf32> to vector<8x8xf32>
      %35 = arith.addf %31, %34 : vector<8x8xf32>
      %c0_20 = arith.constant 0 : index
      %c0_21 = arith.constant 0 : index
      %c0_22 = arith.constant 0 : index
      %36 = vector.load %arg14[%c0_20, %c0_21, %c0_22] : memref<4x8x8xf32, #tpu.memory_space<vmem>>, vector<1x8x8xf32>
      %37 = vector.shape_cast %36 : vector<1x8x8xf32> to vector<8x8xf32>
      %38 = arith.truncf %37 : vector<8x8xf32> to vector<8x8xbf16>
      %39 = arith.truncf %28 : vector<8x8xf32> to vector<8x8xbf16>
      %cst_23 = arith.constant dense<0.000000e+00> : vector<8x8xf32>
      %40 = tpu.matmul %38, %39, %cst_23 {dimension_numbers = #tpu.dot_dimension_numbers<[1], [1], [0], [0], [0, 0, 1, 0], [], []>} : vector<8x8xbf16>, vector<8x8xbf16>, vector<8x8xf32> -> vector<8x8xf32>
      %cst_24 = arith.constant -1.000000e+30 : f32
      %41 = vector.broadcast %cst_24 : f32 to vector<8x8xf32>
      %42 = arith.select %21, %40, %41 : vector<8x8xi1>, vector<8x8xf32>
      %c0_25 = arith.constant 0 : index
      %c0_26 = arith.constant 0 : index
      %c0_27 = arith.constant 0 : index
      %43 = vector.load %arg15[%c0_25, %c0_26, %c0_27] : memref<4x8x1xf32, #tpu.memory_space<vmem>>, vector<1x8x1xf32>
      %44 = vector.shape_cast %43 : vector<1x8x1xf32> to vector<8x1xf32>
      %cst_28 = arith.constant dense<0xFF800000> : vector<8xf32>
      %45 = vector.multi_reduction <maximumf>, %42, %cst_28 [1] : vector<8x8xf32> to vector<8xf32>
      %46 = vector.shape_cast %45 : vector<8xf32> to vector<8x1xf32>
      %47 = arith.maximumf %44, %46 : vector<8x1xf32>
      %48 = arith.subf %44, %47 : vector<8x1xf32>
      %49 = math.exp %48 : vector<8x1xf32>
      %50 = vector.broadcast %47 : vector<8x1xf32> to vector<8x8xf32>
      %51 = arith.subf %42, %50 : vector<8x8xf32>
      %52 = math.exp %51 : vector<8x8xf32>
      %c0_29 = arith.constant 0 : index
      %c0_30 = arith.constant 0 : index
      %c0_31 = arith.constant 0 : index
      %53 = vector.load %arg16[%c0_29, %c0_30, %c0_31] : memref<4x8x1xf32, #tpu.memory_space<vmem>>, vector<1x8x1xf32>
      %54 = vector.shape_cast %53 : vector<1x8x1xf32> to vector<8x1xf32>
      %55 = arith.mulf %49, %54 : vector<8x1xf32>
      %cst_32 = arith.constant dense<0.000000e+00> : vector<8xf32>
      %56 = vector.multi_reduction <add>, %52, %cst_32 [1] : vector<8x8xf32> to vector<8xf32>
      %57 = vector.shape_cast %56 : vector<8xf32> to vector<8x1xf32>
      %58 = arith.addf %55, %57 : vector<8x1xf32>
      %c0_33 = arith.constant 0 : index
      %c0_34 = arith.constant 0 : index
      %c0_35 = arith.constant 0 : index
      %59 = vector.load %arg16[%c0_33, %c0_34, %c0_35] : memref<4x8x1xf32, #tpu.memory_space<vmem>>, vector<1x8x1xf32>
      %60 = vector.shape_cast %59 : vector<1x8x1xf32> to vector<8x1xf32>
      %61 = vector.shape_cast %58 : vector<8x1xf32> to vector<1x8x1xf32>
      tpu.vector_store %arg16[%c0_33, %c0_34, %c0_35], %61 {strides = array<i32>} : memref<4x8x1xf32, #tpu.memory_space<vmem>>, vector<1x8x1xf32>,
      %c0_36 = arith.constant 0 : index
      %c0_37 = arith.constant 0 : index
      %c0_38 = arith.constant 0 : index
      %62 = vector.load %arg17[%c0_36, %c0_37, %c0_38] : memref<4x8x8xf32, #tpu.memory_space<vmem>>, vector<1x8x8xf32>
      %63 = vector.shape_cast %62 : vector<1x8x8xf32> to vector<8x8xf32>
      %64 = vector.broadcast %49 : vector<8x1xf32> to vector<8x8xf32>
      %65 = arith.mulf %64, %63 : vector<8x8xf32>
      %66 = arith.truncf %52 : vector<8x8xf32> to vector<8x8xbf16>
      %67 = arith.truncf %35 : vector<8x8xf32> to vector<8x8xbf16>
      %cst_39 = arith.constant dense<0.000000e+00> : vector<8x8xf32>
      %68 = tpu.matmul %66, %67, %cst_39 {dimension_numbers = #tpu.dot_dimension_numbers<[1], [0], [0], [1], [0, 0, 1, 1], [], []>} : vector<8x8xbf16>, vector<8x8xbf16>, vector<8x8xf32> -> vector<8x8xf32>
      %69 = arith.addf %65, %68 : vector<8x8xf32>
      %c0_40 = arith.constant 0 : index
      %c0_41 = arith.constant 0 : index
      %c0_42 = arith.constant 0 : index
      %70 = vector.load %arg17[%c0_40, %c0_41, %c0_42] : memref<4x8x8xf32, #tpu.memory_space<vmem>>, vector<1x8x8xf32>
      %71 = vector.shape_cast %70 : vector<1x8x8xf32> to vector<8x8xf32>
      %72 = vector.shape_cast %69 : vector<8x8xf32> to vector<1x8x8xf32>
      tpu.vector_store %arg17[%c0_40, %c0_41, %c0_42], %72 {strides = array<i32>} : memref<4x8x8xf32, #tpu.memory_space<vmem>>, vector<1x8x8xf32>,
      %c0_43 = arith.constant 0 : index
      %c0_44 = arith.constant 0 : index
      %c0_45 = arith.constant 0 : index
      %73 = vector.load %arg15[%c0_43, %c0_44, %c0_45] : memref<4x8x1xf32, #tpu.memory_space<vmem>>, vector<1x8x1xf32>
      %74 = vector.shape_cast %73 : vector<1x8x1xf32> to vector<8x1xf32>
      %75 = vector.shape_cast %47 : vector<8x1xf32> to vector<1x8x1xf32>
      tpu.vector_store %arg15[%c0_43, %c0_44, %c0_45], %75 {strides = array<i32>} : memref<4x8x1xf32, #tpu.memory_space<vmem>>, vector<1x8x1xf32>,
      %c1 = arith.constant 1 : index
      %c0_46 = arith.constant 0 : index
      %c0_47 = arith.constant 0 : index
      %76 = vector.load %arg7[%c1, %c0_46, %c0_47] : memref<4x32x8xbf16, #tpu.memory_space<vmem>>, vector<1x32x8xbf16>
      %77 = vector.shape_cast %76 : vector<1x32x8xbf16> to vector<32x8xbf16>
      %cst_48 = arith.constant dense<0.000000e+00> : vector<8x8xf32>
      %78 = tpu.matmul %14, %77, %cst_48 {dimension_numbers = #tpu.dot_dimension_numbers<[1], [0], [0], [1], [0, 0, 1, 1], [], []>} : vector<8x32xbf16>, vector<32x8xbf16>, vector<8x8xf32> -> vector<8x8xf32>
      %c1_49 = arith.constant 1 : index
      %c0_50 = arith.constant 0 : index
      %c0_51 = arith.constant 0 : index
      %79 = vector.load %arg8[%c1_49, %c0_50, %c0_51] : memref<4x1x8xf32, #tpu.memory_space<vmem>>, vector<1x1x8xf32>
      %80 = vector.shape_cast %79 : vector<1x1x8xf32> to vector<1x8xf32>
      %81 = vector.broadcast %80 : vector<1x8xf32> to vector<8x8xf32>
      %82 = arith.addf %78, %81 : vector<8x8xf32>
      %c1_52 = arith.constant 1 : index
      %c0_53 = arith.constant 0 : index
      %c0_54 = arith.constant 0 : index
      %83 = vector.load %arg9[%c1_52, %c0_53, %c0_54] : memref<4x32x8xbf16, #tpu.memory_space<vmem>>, vector<1x32x8xbf16>
      %84 = vector.shape_cast %83 : vector<1x32x8xbf16> to vector<32x8xbf16>
      %cst_55 = arith.constant dense<0.000000e+00> : vector<8x8xf32>
      %85 = tpu.matmul %14, %84, %cst_55 {dimension_numbers = #tpu.dot_dimension_numbers<[1], [0], [0], [1], [0, 0, 1, 1], [], []>} : vector<8x32xbf16>, vector<32x8xbf16>, vector<8x8xf32> -> vector<8x8xf32>
      %c1_56 = arith.constant 1 : index
      %c0_57 = arith.constant 0 : index
      %c0_58 = arith.constant 0 : index
      %86 = vector.load %arg10[%c1_56, %c0_57, %c0_58] : memref<4x1x8xf32, #tpu.memory_space<vmem>>, vector<1x1x8xf32>
      %87 = vector.shape_cast %86 : vector<1x1x8xf32> to vector<1x8xf32>
      %88 = vector.broadcast %87 : vector<1x8xf32> to vector<8x8xf32>
      %89 = arith.addf %85, %88 : vector<8x8xf32>
      %c1_59 = arith.constant 1 : index
      %c0_60 = arith.constant 0 : index
      %c0_61 = arith.constant 0 : index
      %90 = vector.load %arg14[%c1_59, %c0_60, %c0_61] : memref<4x8x8xf32, #tpu.memory_space<vmem>>, vector<1x8x8xf32>
      %91 = vector.shape_cast %90 : vector<1x8x8xf32> to vector<8x8xf32>
      %92 = arith.truncf %91 : vector<8x8xf32> to vector<8x8xbf16>
      %93 = arith.truncf %82 : vector<8x8xf32> to vector<8x8xbf16>
      %cst_62 = arith.constant dense<0.000000e+00> : vector<8x8xf32>
      %94 = tpu.matmul %92, %93, %cst_62 {dimension_numbers = #tpu.dot_dimension_numbers<[1], [1], [0], [0], [0, 0, 1, 0], [], []>} : vector<8x8xbf16>, vector<8x8xbf16>, vector<8x8xf32> -> vector<8x8xf32>
      %cst_63 = arith.constant -1.000000e+30 : f32
      %95 = vector.broadcast %cst_63 : f32 to vector<8x8xf32>
      %96 = arith.select %21, %94, %95 : vector<8x8xi1>, vector<8x8xf32>
      %c1_64 = arith.constant 1 : index
      %c0_65 = arith.constant 0 : index
      %c0_66 = arith.constant 0 : index
      %97 = vector.load %arg15[%c1_64, %c0_65, %c0_66] : memref<4x8x1xf32, #tpu.memory_space<vmem>>, vector<1x8x1xf32>
      %98 = vector.shape_cast %97 : vector<1x8x1xf32> to vector<8x1xf32>
      %cst_67 = arith.constant dense<0xFF800000> : vector<8xf32>
      %99 = vector.multi_reduction <maximumf>, %96, %cst_67 [1] : vector<8x8xf32> to vector<8xf32>
      %100 = vector.shape_cast %99 : vector<8xf32> to vector<8x1xf32>
      %101 = arith.maximumf %98, %100 : vector<8x1xf32>
      %102 = arith.subf %98, %101 : vector<8x1xf32>
      %103 = math.exp %102 : vector<8x1xf32>
      %104 = vector.broadcast %101 : vector<8x1xf32> to vector<8x8xf32>
      %105 = arith.subf %96, %104 : vector<8x8xf32>
      %106 = math.exp %105 : vector<8x8xf32>
      %c1_68 = arith.constant 1 : index
      %c0_69 = arith.constant 0 : index
      %c0_70 = arith.constant 0 : index
      %107 = vector.load %arg16[%c1_68, %c0_69, %c0_70] : memref<4x8x1xf32, #tpu.memory_space<vmem>>, vector<1x8x1xf32>
      %108 = vector.shape_cast %107 : vector<1x8x1xf32> to vector<8x1xf32>
      %109 = arith.mulf %103, %108 : vector<8x1xf32>
      %cst_71 = arith.constant dense<0.000000e+00> : vector<8xf32>
      %110 = vector.multi_reduction <add>, %106, %cst_71 [1] : vector<8x8xf32> to vector<8xf32>
      %111 = vector.shape_cast %110 : vector<8xf32> to vector<8x1xf32>
      %112 = arith.addf %109, %111 : vector<8x1xf32>
      %c1_72 = arith.constant 1 : index
      %c0_73 = arith.constant 0 : index
      %c0_74 = arith.constant 0 : index
      %113 = vector.load %arg16[%c1_72, %c0_73, %c0_74] : memref<4x8x1xf32, #tpu.memory_space<vmem>>, vector<1x8x1xf32>
      %114 = vector.shape_cast %113 : vector<1x8x1xf32> to vector<8x1xf32>
      %115 = vector.shape_cast %112 : vector<8x1xf32> to vector<1x8x1xf32>
      tpu.vector_store %arg16[%c1_72, %c0_73, %c0_74], %115 {strides = array<i32>} : memref<4x8x1xf32, #tpu.memory_space<vmem>>, vector<1x8x1xf32>,
      %c1_75 = arith.constant 1 : index
      %c0_76 = arith.constant 0 : index
      %c0_77 = arith.constant 0 : index
      %116 = vector.load %arg17[%c1_75, %c0_76, %c0_77] : memref<4x8x8xf32, #tpu.memory_space<vmem>>, vector<1x8x8xf32>
      %117 = vector.shape_cast %116 : vector<1x8x8xf32> to vector<8x8xf32>
      %118 = vector.broadcast %103 : vector<8x1xf32> to vector<8x8xf32>
      %119 = arith.mulf %118, %117 : vector<8x8xf32>
      %120 = arith.truncf %106 : vector<8x8xf32> to vector<8x8xbf16>
      %121 = arith.truncf %89 : vector<8x8xf32> to vector<8x8xbf16>
      %cst_78 = arith.constant dense<0.000000e+00> : vector<8x8xf32>
      %122 = tpu.matmul %120, %121, %cst_78 {dimension_numbers = #tpu.dot_dimension_numbers<[1], [0], [0], [1], [0, 0, 1, 1], [], []>} : vector<8x8xbf16>, vector<8x8xbf16>, vector<8x8xf32> -> vector<8x8xf32>
      %123 = arith.addf %119, %122 : vector<8x8xf32>
      %c1_79 = arith.constant 1 : index
      %c0_80 = arith.constant 0 : index
      %c0_81 = arith.constant 0 : index
      %124 = vector.load %arg17[%c1_79, %c0_80, %c0_81] : memref<4x8x8xf32, #tpu.memory_space<vmem>>, vector<1x8x8xf32>
      %125 = vector.shape_cast %124 : vector<1x8x8xf32> to vector<8x8xf32>
      %126 = vector.shape_cast %123 : vector<8x8xf32> to vector<1x8x8xf32>
      tpu.vector_store %arg17[%c1_79, %c0_80, %c0_81], %126 {strides = array<i32>} : memref<4x8x8xf32, #tpu.memory_space<vmem>>, vector<1x8x8xf32>,
      %c1_82 = arith.constant 1 : index
      %c0_83 = arith.constant 0 : index
      %c0_84 = arith.constant 0 : index
      %127 = vector.load %arg15[%c1_82, %c0_83, %c0_84] : memref<4x8x1xf32, #tpu.memory_space<vmem>>, vector<1x8x1xf32>
      %128 = vector.shape_cast %127 : vector<1x8x1xf32> to vector<8x1xf32>
      %129 = vector.shape_cast %101 : vector<8x1xf32> to vector<1x8x1xf32>
      tpu.vector_store %arg15[%c1_82, %c0_83, %c0_84], %129 {strides = array<i32>} : memref<4x8x1xf32, #tpu.memory_space<vmem>>, vector<1x8x1xf32>,
      %c2 = arith.constant 2 : index
      %c0_85 = arith.constant 0 : index
      %c0_86 = arith.constant 0 : index
      %130 = vector.load %arg7[%c2, %c0_85, %c0_86] : memref<4x32x8xbf16, #tpu.memory_space<vmem>>, vector<1x32x8xbf16>
      %131 = vector.shape_cast %130 : vector<1x32x8xbf16> to vector<32x8xbf16>
      %cst_87 = arith.constant dense<0.000000e+00> : vector<8x8xf32>
      %132 = tpu.matmul %14, %131, %cst_87 {dimension_numbers = #tpu.dot_dimension_numbers<[1], [0], [0], [1], [0, 0, 1, 1], [], []>} : vector<8x32xbf16>, vector<32x8xbf16>, vector<8x8xf32> -> vector<8x8xf32>
      %c2_88 = arith.constant 2 : index
      %c0_89 = arith.constant 0 : index
      %c0_90 = arith.constant 0 : index
      %133 = vector.load %arg8[%c2_88, %c0_89, %c0_90] : memref<4x1x8xf32, #tpu.memory_space<vmem>>, vector<1x1x8xf32>
      %134 = vector.shape_cast %133 : vector<1x1x8xf32> to vector<1x8xf32>
      %135 = vector.broadcast %134 : vector<1x8xf32> to vector<8x8xf32>
      %136 = arith.addf %132, %135 : vector<8x8xf32>
      %c2_91 = arith.constant 2 : index
      %c0_92 = arith.constant 0 : index
      %c0_93 = arith.constant 0 : index
      %137 = vector.load %arg9[%c2_91, %c0_92, %c0_93] : memref<4x32x8xbf16, #tpu.memory_space<vmem>>, vector<1x32x8xbf16>
      %138 = vector.shape_cast %137 : vector<1x32x8xbf16> to vector<32x8xbf16>
      %cst_94 = arith.constant dense<0.000000e+00> : vector<8x8xf32>
      %139 = tpu.matmul %14, %138, %cst_94 {dimension_numbers = #tpu.dot_dimension_numbers<[1], [0], [0], [1], [0, 0, 1, 1], [], []>} : vector<8x32xbf16>, vector<32x8xbf16>, vector<8x8xf32> -> vector<8x8xf32>
      %c2_95 = arith.constant 2 : index
      %c0_96 = arith.constant 0 : index
      %c0_97 = arith.constant 0 : index
      %140 = vector.load %arg10[%c2_95, %c0_96, %c0_97] : memref<4x1x8xf32, #tpu.memory_space<vmem>>, vector<1x1x8xf32>
      %141 = vector.shape_cast %140 : vector<1x1x8xf32> to vector<1x8xf32>
      %142 = vector.broadcast %141 : vector<1x8xf32> to vector<8x8xf32>
      %143 = arith.addf %139, %142 : vector<8x8xf32>
      %c2_98 = arith.constant 2 : index
      %c0_99 = arith.constant 0 : index
      %c0_100 = arith.constant 0 : index
      %144 = vector.load %arg14[%c2_98, %c0_99, %c0_100] : memref<4x8x8xf32, #tpu.memory_space<vmem>>, vector<1x8x8xf32>
      %145 = vector.shape_cast %144 : vector<1x8x8xf32> to vector<8x8xf32>
      %146 = arith.truncf %145 : vector<8x8xf32> to vector<8x8xbf16>
      %147 = arith.truncf %136 : vector<8x8xf32> to vector<8x8xbf16>
      %cst_101 = arith.constant dense<0.000000e+00> : vector<8x8xf32>
      %148 = tpu.matmul %146, %147, %cst_101 {dimension_numbers = #tpu.dot_dimension_numbers<[1], [1], [0], [0], [0, 0, 1, 0], [], []>} : vector<8x8xbf16>, vector<8x8xbf16>, vector<8x8xf32> -> vector<8x8xf32>
      %cst_102 = arith.constant -1.000000e+30 : f32
      %149 = vector.broadcast %cst_102 : f32 to vector<8x8xf32>
      %150 = arith.select %21, %148, %149 : vector<8x8xi1>, vector<8x8xf32>
      %c2_103 = arith.constant 2 : index
      %c0_104 = arith.constant 0 : index
      %c0_105 = arith.constant 0 : index
      %151 = vector.load %arg15[%c2_103, %c0_104, %c0_105] : memref<4x8x1xf32, #tpu.memory_space<vmem>>, vector<1x8x1xf32>
      %152 = vector.shape_cast %151 : vector<1x8x1xf32> to vector<8x1xf32>
      %cst_106 = arith.constant dense<0xFF800000> : vector<8xf32>
      %153 = vector.multi_reduction <maximumf>, %150, %cst_106 [1] : vector<8x8xf32> to vector<8xf32>
      %154 = vector.shape_cast %153 : vector<8xf32> to vector<8x1xf32>
      %155 = arith.maximumf %152, %154 : vector<8x1xf32>
      %156 = arith.subf %152, %155 : vector<8x1xf32>
      %157 = math.exp %156 : vector<8x1xf32>
      %158 = vector.broadcast %155 : vector<8x1xf32> to vector<8x8xf32>
      %159 = arith.subf %150, %158 : vector<8x8xf32>
      %160 = math.exp %159 : vector<8x8xf32>
      %c2_107 = arith.constant 2 : index
      %c0_108 = arith.constant 0 : index
      %c0_109 = arith.constant 0 : index
      %161 = vector.load %arg16[%c2_107, %c0_108, %c0_109] : memref<4x8x1xf32, #tpu.memory_space<vmem>>, vector<1x8x1xf32>
      %162 = vector.shape_cast %161 : vector<1x8x1xf32> to vector<8x1xf32>
      %163 = arith.mulf %157, %162 : vector<8x1xf32>
      %cst_110 = arith.constant dense<0.000000e+00> : vector<8xf32>
      %164 = vector.multi_reduction <add>, %160, %cst_110 [1] : vector<8x8xf32> to vector<8xf32>
      %165 = vector.shape_cast %164 : vector<8xf32> to vector<8x1xf32>
      %166 = arith.addf %163, %165 : vector<8x1xf32>
      %c2_111 = arith.constant 2 : index
      %c0_112 = arith.constant 0 : index
      %c0_113 = arith.constant 0 : index
      %167 = vector.load %arg16[%c2_111, %c0_112, %c0_113] : memref<4x8x1xf32, #tpu.memory_space<vmem>>, vector<1x8x1xf32>
      %168 = vector.shape_cast %167 : vector<1x8x1xf32> to vector<8x1xf32>
      %169 = vector.shape_cast %166 : vector<8x1xf32> to vector<1x8x1xf32>
      tpu.vector_store %arg16[%c2_111, %c0_112, %c0_113], %169 {strides = array<i32>} : memref<4x8x1xf32, #tpu.memory_space<vmem>>, vector<1x8x1xf32>,
      %c2_114 = arith.constant 2 : index
      %c0_115 = arith.constant 0 : index
      %c0_116 = arith.constant 0 : index
      %170 = vector.load %arg17[%c2_114, %c0_115, %c0_116] : memref<4x8x8xf32, #tpu.memory_space<vmem>>, vector<1x8x8xf32>
      %171 = vector.shape_cast %170 : vector<1x8x8xf32> to vector<8x8xf32>
      %172 = vector.broadcast %157 : vector<8x1xf32> to vector<8x8xf32>
      %173 = arith.mulf %172, %171 : vector<8x8xf32>
      %174 = arith.truncf %160 : vector<8x8xf32> to vector<8x8xbf16>
      %175 = arith.truncf %143 : vector<8x8xf32> to vector<8x8xbf16>
      %cst_117 = arith.constant dense<0.000000e+00> : vector<8x8xf32>
      %176 = tpu.matmul %174, %175, %cst_117 {dimension_numbers = #tpu.dot_dimension_numbers<[1], [0], [0], [1], [0, 0, 1, 1], [], []>} : vector<8x8xbf16>, vector<8x8xbf16>, vector<8x8xf32> -> vector<8x8xf32>
      %177 = arith.addf %173, %176 : vector<8x8xf32>
      %c2_118 = arith.constant 2 : index
      %c0_119 = arith.constant 0 : index
      %c0_120 = arith.constant 0 : index
      %178 = vector.load %arg17[%c2_118, %c0_119, %c0_120] : memref<4x8x8xf32, #tpu.memory_space<vmem>>, vector<1x8x8xf32>
      %179 = vector.shape_cast %178 : vector<1x8x8xf32> to vector<8x8xf32>
      %180 = vector.shape_cast %177 : vector<8x8xf32> to vector<1x8x8xf32>
      tpu.vector_store %arg17[%c2_118, %c0_119, %c0_120], %180 {strides = array<i32>} : memref<4x8x8xf32, #tpu.memory_space<vmem>>, vector<1x8x8xf32>,
      %c2_121 = arith.constant 2 : index
      %c0_122 = arith.constant 0 : index
      %c0_123 = arith.constant 0 : index
      %181 = vector.load %arg15[%c2_121, %c0_122, %c0_123] : memref<4x8x1xf32, #tpu.memory_space<vmem>>, vector<1x8x1xf32>
      %182 = vector.shape_cast %181 : vector<1x8x1xf32> to vector<8x1xf32>
      %183 = vector.shape_cast %155 : vector<8x1xf32> to vector<1x8x1xf32>
      tpu.vector_store %arg15[%c2_121, %c0_122, %c0_123], %183 {strides = array<i32>} : memref<4x8x1xf32, #tpu.memory_space<vmem>>, vector<1x8x1xf32>,
      %c3 = arith.constant 3 : index
      %c0_124 = arith.constant 0 : index
      %c0_125 = arith.constant 0 : index
      %184 = vector.load %arg7[%c3, %c0_124, %c0_125] : memref<4x32x8xbf16, #tpu.memory_space<vmem>>, vector<1x32x8xbf16>
      %185 = vector.shape_cast %184 : vector<1x32x8xbf16> to vector<32x8xbf16>
      %cst_126 = arith.constant dense<0.000000e+00> : vector<8x8xf32>
      %186 = tpu.matmul %14, %185, %cst_126 {dimension_numbers = #tpu.dot_dimension_numbers<[1], [0], [0], [1], [0, 0, 1, 1], [], []>} : vector<8x32xbf16>, vector<32x8xbf16>, vector<8x8xf32> -> vector<8x8xf32>
      %c3_127 = arith.constant 3 : index
      %c0_128 = arith.constant 0 : index
      %c0_129 = arith.constant 0 : index
      %187 = vector.load %arg8[%c3_127, %c0_128, %c0_129] : memref<4x1x8xf32, #tpu.memory_space<vmem>>, vector<1x1x8xf32>
      %188 = vector.shape_cast %187 : vector<1x1x8xf32> to vector<1x8xf32>
      %189 = vector.broadcast %188 : vector<1x8xf32> to vector<8x8xf32>
      %190 = arith.addf %186, %189 : vector<8x8xf32>
      %c3_130 = arith.constant 3 : index
      %c0_131 = arith.constant 0 : index
      %c0_132 = arith.constant 0 : index
      %191 = vector.load %arg9[%c3_130, %c0_131, %c0_132] : memref<4x32x8xbf16, #tpu.memory_space<vmem>>, vector<1x32x8xbf16>
      %192 = vector.shape_cast %191 : vector<1x32x8xbf16> to vector<32x8xbf16>
      %cst_133 = arith.constant dense<0.000000e+00> : vector<8x8xf32>
      %193 = tpu.matmul %14, %192, %cst_133 {dimension_numbers = #tpu.dot_dimension_numbers<[1], [0], [0], [1], [0, 0, 1, 1], [], []>} : vector<8x32xbf16>, vector<32x8xbf16>, vector<8x8xf32> -> vector<8x8xf32>
      %c3_134 = arith.constant 3 : index
      %c0_135 = arith.constant 0 : index
      %c0_136 = arith.constant 0 : index
      %194 = vector.load %arg10[%c3_134, %c0_135, %c0_136] : memref<4x1x8xf32, #tpu.memory_space<vmem>>, vector<1x1x8xf32>
      %195 = vector.shape_cast %194 : vector<1x1x8xf32> to vector<1x8xf32>
      %196 = vector.broadcast %195 : vector<1x8xf32> to vector<8x8xf32>
      %197 = arith.addf %193, %196 : vector<8x8xf32>
      %c3_137 = arith.constant 3 : index
      %c0_138 = arith.constant 0 : index
      %c0_139 = arith.constant 0 : index
      %198 = vector.load %arg14[%c3_137, %c0_138, %c0_139] : memref<4x8x8xf32, #tpu.memory_space<vmem>>, vector<1x8x8xf32>
      %199 = vector.shape_cast %198 : vector<1x8x8xf32> to vector<8x8xf32>
      %200 = arith.truncf %199 : vector<8x8xf32> to vector<8x8xbf16>
      %201 = arith.truncf %190 : vector<8x8xf32> to vector<8x8xbf16>
      %cst_140 = arith.constant dense<0.000000e+00> : vector<8x8xf32>
      %202 = tpu.matmul %200, %201, %cst_140 {dimension_numbers = #tpu.dot_dimension_numbers<[1], [1], [0], [0], [0, 0, 1, 0], [], []>} : vector<8x8xbf16>, vector<8x8xbf16>, vector<8x8xf32> -> vector<8x8xf32>
      %cst_141 = arith.constant -1.000000e+30 : f32
      %203 = vector.broadcast %cst_141 : f32 to vector<8x8xf32>
      %204 = arith.select %21, %202, %203 : vector<8x8xi1>, vector<8x8xf32>
      %c3_142 = arith.constant 3 : index
      %c0_143 = arith.constant 0 : index
      %c0_144 = arith.constant 0 : index
      %205 = vector.load %arg15[%c3_142, %c0_143, %c0_144] : memref<4x8x1xf32, #tpu.memory_space<vmem>>, vector<1x8x1xf32>
      %206 = vector.shape_cast %205 : vector<1x8x1xf32> to vector<8x1xf32>
      %cst_145 = arith.constant dense<0xFF800000> : vector<8xf32>
      %207 = vector.multi_reduction <maximumf>, %204, %cst_145 [1] : vector<8x8xf32> to vector<8xf32>
      %208 = vector.shape_cast %207 : vector<8xf32> to vector<8x1xf32>
      %209 = arith.maximumf %206, %208 : vector<8x1xf32>
      %210 = arith.subf %206, %209 : vector<8x1xf32>
      %211 = math.exp %210 : vector<8x1xf32>
      %212 = vector.broadcast %209 : vector<8x1xf32> to vector<8x8xf32>
      %213 = arith.subf %204, %212 : vector<8x8xf32>
      %214 = math.exp %213 : vector<8x8xf32>
      %c3_146 = arith.constant 3 : index
      %c0_147 = arith.constant 0 : index
      %c0_148 = arith.constant 0 : index
      %215 = vector.load %arg16[%c3_146, %c0_147, %c0_148] : memref<4x8x1xf32, #tpu.memory_space<vmem>>, vector<1x8x1xf32>
      %216 = vector.shape_cast %215 : vector<1x8x1xf32> to vector<8x1xf32>
      %217 = arith.mulf %211, %216 : vector<8x1xf32>
      %cst_149 = arith.constant dense<0.000000e+00> : vector<8xf32>
      %218 = vector.multi_reduction <add>, %214, %cst_149 [1] : vector<8x8xf32> to vector<8xf32>
      %219 = vector.shape_cast %218 : vector<8xf32> to vector<8x1xf32>
      %220 = arith.addf %217, %219 : vector<8x1xf32>
      %c3_150 = arith.constant 3 : index
      %c0_151 = arith.constant 0 : index
      %c0_152 = arith.constant 0 : index
      %221 = vector.load %arg16[%c3_150, %c0_151, %c0_152] : memref<4x8x1xf32, #tpu.memory_space<vmem>>, vector<1x8x1xf32>
      %222 = vector.shape_cast %221 : vector<1x8x1xf32> to vector<8x1xf32>
      %223 = vector.shape_cast %220 : vector<8x1xf32> to vector<1x8x1xf32>
      tpu.vector_store %arg16[%c3_150, %c0_151, %c0_152], %223 {strides = array<i32>} : memref<4x8x1xf32, #tpu.memory_space<vmem>>, vector<1x8x1xf32>,
      %c3_153 = arith.constant 3 : index
      %c0_154 = arith.constant 0 : index
      %c0_155 = arith.constant 0 : index
      %224 = vector.load %arg17[%c3_153, %c0_154, %c0_155] : memref<4x8x8xf32, #tpu.memory_space<vmem>>, vector<1x8x8xf32>
      %225 = vector.shape_cast %224 : vector<1x8x8xf32> to vector<8x8xf32>
      %226 = vector.broadcast %211 : vector<8x1xf32> to vector<8x8xf32>
      %227 = arith.mulf %226, %225 : vector<8x8xf32>
      %228 = arith.truncf %214 : vector<8x8xf32> to vector<8x8xbf16>
      %229 = arith.truncf %197 : vector<8x8xf32> to vector<8x8xbf16>
      %cst_156 = arith.constant dense<0.000000e+00> : vector<8x8xf32>
      %230 = tpu.matmul %228, %229, %cst_156 {dimension_numbers = #tpu.dot_dimension_numbers<[1], [0], [0], [1], [0, 0, 1, 1], [], []>} : vector<8x8xbf16>, vector<8x8xbf16>, vector<8x8xf32> -> vector<8x8xf32>
      %231 = arith.addf %227, %230 : vector<8x8xf32>
      %c3_157 = arith.constant 3 : index
      %c0_158 = arith.constant 0 : index
      %c0_159 = arith.constant 0 : index
      %232 = vector.load %arg17[%c3_157, %c0_158, %c0_159] : memref<4x8x8xf32, #tpu.memory_space<vmem>>, vector<1x8x8xf32>
      %233 = vector.shape_cast %232 : vector<1x8x8xf32> to vector<8x8xf32>
      %234 = vector.shape_cast %231 : vector<8x8xf32> to vector<1x8x8xf32>
      tpu.vector_store %arg17[%c3_157, %c0_158, %c0_159], %234 {strides = array<i32>} : memref<4x8x8xf32, #tpu.memory_space<vmem>>, vector<1x8x8xf32>,
      %c3_160 = arith.constant 3 : index
      %c0_161 = arith.constant 0 : index
      %c0_162 = arith.constant 0 : index
      %235 = vector.load %arg15[%c3_160, %c0_161, %c0_162] : memref<4x8x1xf32, #tpu.memory_space<vmem>>, vector<1x8x1xf32>
      %236 = vector.shape_cast %235 : vector<1x8x1xf32> to vector<8x1xf32>
      %237 = vector.shape_cast %209 : vector<8x1xf32> to vector<1x8x1xf32>
      tpu.vector_store %arg15[%c3_160, %c0_161, %c0_162], %237 {strides = array<i32>} : memref<4x8x1xf32, #tpu.memory_space<vmem>>, vector<1x8x1xf32>,
    } else {
    }
    %c0_i32_3 = arith.constant 0 : i32
    %9 = arith.cmpi eq, %arg2, %c0_i32_3 : i32
    %10 = arith.extui %9 : i1 to i32
    %c0_i32_4 = arith.constant 0 : i32
    %11 = arith.cmpi ne, %10, %c0_i32_4 : i32
    scf.if %11 {
      %cst = arith.constant 0.000000e+00 : f32
      %12 = vector.broadcast %cst : f32 to vector<8x32xf32>
      %c0 = arith.constant 0 : index
      %c0_5 = arith.constant 0 : index
      %c0_6 = arith.constant 0 : index
      %13 = vector.load %arg17[%c0, %c0_5, %c0_6] : memref<4x8x8xf32, #tpu.memory_space<vmem>>, vector<1x8x8xf32>
      %14 = vector.shape_cast %13 : vector<1x8x8xf32> to vector<8x8xf32>
      %c0_7 = arith.constant 0 : index
      %c0_8 = arith.constant 0 : index
      %c0_9 = arith.constant 0 : index
      %15 = vector.load %arg16[%c0_7, %c0_8, %c0_9] : memref<4x8x1xf32, #tpu.memory_space<vmem>>, vector<1x8x1xf32>
      %16 = vector.shape_cast %15 : vector<1x8x1xf32> to vector<8x1xf32>
      %17 = tpu.reciprocal %16 {approx = true} : vector<8x1xf32> -> vector<8x1xf32>
      %18 = vector.broadcast %17 : vector<8x1xf32> to vector<8x8xf32>
      %19 = arith.mulf %14, %18 : vector<8x8xf32>
      %20 = arith.truncf %19 : vector<8x8xf32> to vector<8x8xbf16>
      %c0_10 = arith.constant 0 : index
      %c0_11 = arith.constant 0 : index
      %c0_12 = arith.constant 0 : index
      %21 = vector.load %arg11[%c0_10, %c0_11, %c0_12] : memref<4x8x32xbf16, #tpu.memory_space<vmem>>, vector<1x8x32xbf16>
      %22 = vector.shape_cast %21 : vector<1x8x32xbf16> to vector<8x32xbf16>
      %cst_13 = arith.constant dense<0.000000e+00> : vector<8x32xf32>
      %23 = tpu.matmul %20, %22, %cst_13 {dimension_numbers = #tpu.dot_dimension_numbers<[1], [0], [0], [1], [0, 0, 1, 1], [], []>} : vector<8x8xbf16>, vector<8x32xbf16>, vector<8x32xf32> -> vector<8x32xf32>
      %24 = arith.addf %12, %23 : vector<8x32xf32>
      %c1 = arith.constant 1 : index
      %c0_14 = arith.constant 0 : index
      %c0_15 = arith.constant 0 : index
      %25 = vector.load %arg17[%c1, %c0_14, %c0_15] : memref<4x8x8xf32, #tpu.memory_space<vmem>>, vector<1x8x8xf32>
      %26 = vector.shape_cast %25 : vector<1x8x8xf32> to vector<8x8xf32>
      %c1_16 = arith.constant 1 : index
      %c0_17 = arith.constant 0 : index
      %c0_18 = arith.constant 0 : index
      %27 = vector.load %arg16[%c1_16, %c0_17, %c0_18] : memref<4x8x1xf32, #tpu.memory_space<vmem>>, vector<1x8x1xf32>
      %28 = vector.shape_cast %27 : vector<1x8x1xf32> to vector<8x1xf32>
      %29 = tpu.reciprocal %28 {approx = true} : vector<8x1xf32> -> vector<8x1xf32>
      %30 = vector.broadcast %29 : vector<8x1xf32> to vector<8x8xf32>
      %31 = arith.mulf %26, %30 : vector<8x8xf32>
      %32 = arith.truncf %31 : vector<8x8xf32> to vector<8x8xbf16>
      %c1_19 = arith.constant 1 : index
      %c0_20 = arith.constant 0 : index
      %c0_21 = arith.constant 0 : index
      %33 = vector.load %arg11[%c1_19, %c0_20, %c0_21] : memref<4x8x32xbf16, #tpu.memory_space<vmem>>, vector<1x8x32xbf16>
      %34 = vector.shape_cast %33 : vector<1x8x32xbf16> to vector<8x32xbf16>
      %cst_22 = arith.constant dense<0.000000e+00> : vector<8x32xf32>
      %35 = tpu.matmul %32, %34, %cst_22 {dimension_numbers = #tpu.dot_dimension_numbers<[1], [0], [0], [1], [0, 0, 1, 1], [], []>} : vector<8x8xbf16>, vector<8x32xbf16>, vector<8x32xf32> -> vector<8x32xf32>
      %36 = arith.addf %24, %35 : vector<8x32xf32>
      %c2 = arith.constant 2 : index
      %c0_23 = arith.constant 0 : index
      %c0_24 = arith.constant 0 : index
      %37 = vector.load %arg17[%c2, %c0_23, %c0_24] : memref<4x8x8xf32, #tpu.memory_space<vmem>>, vector<1x8x8xf32>
      %38 = vector.shape_cast %37 : vector<1x8x8xf32> to vector<8x8xf32>
      %c2_25 = arith.constant 2 : index
      %c0_26 = arith.constant 0 : index
      %c0_27 = arith.constant 0 : index
      %39 = vector.load %arg16[%c2_25, %c0_26, %c0_27] : memref<4x8x1xf32, #tpu.memory_space<vmem>>, vector<1x8x1xf32>
      %40 = vector.shape_cast %39 : vector<1x8x1xf32> to vector<8x1xf32>
      %41 = tpu.reciprocal %40 {approx = true} : vector<8x1xf32> -> vector<8x1xf32>
      %42 = vector.broadcast %41 : vector<8x1xf32> to vector<8x8xf32>
      %43 = arith.mulf %38, %42 : vector<8x8xf32>
      %44 = arith.truncf %43 : vector<8x8xf32> to vector<8x8xbf16>
      %c2_28 = arith.constant 2 : index
      %c0_29 = arith.constant 0 : index
      %c0_30 = arith.constant 0 : index
      %45 = vector.load %arg11[%c2_28, %c0_29, %c0_30] : memref<4x8x32xbf16, #tpu.memory_space<vmem>>, vector<1x8x32xbf16>
      %46 = vector.shape_cast %45 : vector<1x8x32xbf16> to vector<8x32xbf16>
      %cst_31 = arith.constant dense<0.000000e+00> : vector<8x32xf32>
      %47 = tpu.matmul %44, %46, %cst_31 {dimension_numbers = #tpu.dot_dimension_numbers<[1], [0], [0], [1], [0, 0, 1, 1], [], []>} : vector<8x8xbf16>, vector<8x32xbf16>, vector<8x32xf32> -> vector<8x32xf32>
      %48 = arith.addf %36, %47 : vector<8x32xf32>
      %c3 = arith.constant 3 : index
      %c0_32 = arith.constant 0 : index
      %c0_33 = arith.constant 0 : index
      %49 = vector.load %arg17[%c3, %c0_32, %c0_33] : memref<4x8x8xf32, #tpu.memory_space<vmem>>, vector<1x8x8xf32>
      %50 = vector.shape_cast %49 : vector<1x8x8xf32> to vector<8x8xf32>
      %c3_34 = arith.constant 3 : index
      %c0_35 = arith.constant 0 : index
      %c0_36 = arith.constant 0 : index
      %51 = vector.load %arg16[%c3_34, %c0_35, %c0_36] : memref<4x8x1xf32, #tpu.memory_space<vmem>>, vector<1x8x1xf32>
      %52 = vector.shape_cast %51 : vector<1x8x1xf32> to vector<8x1xf32>
      %53 = tpu.reciprocal %52 {approx = true} : vector<8x1xf32> -> vector<8x1xf32>
      %54 = vector.broadcast %53 : vector<8x1xf32> to vector<8x8xf32>
      %55 = arith.mulf %50, %54 : vector<8x8xf32>
      %56 = arith.truncf %55 : vector<8x8xf32> to vector<8x8xbf16>
      %c3_37 = arith.constant 3 : index
      %c0_38 = arith.constant 0 : index
      %c0_39 = arith.constant 0 : index
      %57 = vector.load %arg11[%c3_37, %c0_38, %c0_39] : memref<4x8x32xbf16, #tpu.memory_space<vmem>>, vector<1x8x32xbf16>
      %58 = vector.shape_cast %57 : vector<1x8x32xbf16> to vector<8x32xbf16>
      %cst_40 = arith.constant dense<0.000000e+00> : vector<8x32xf32>
      %59 = tpu.matmul %56, %58, %cst_40 {dimension_numbers = #tpu.dot_dimension_numbers<[1], [0], [0], [1], [0, 0, 1, 1], [], []>} : vector<8x8xbf16>, vector<8x32xbf16>, vector<8x32xf32> -> vector<8x32xf32>
      %60 = arith.addf %48, %59 : vector<8x32xf32>
      %c0_41 = arith.constant 0 : index
      %c0_42 = arith.constant 0 : index
      %61 = vector.load %arg12[%c0_41, %c0_42] : memref<1x32xf32, #tpu.memory_space<vmem>>, vector<1x32xf32>
      %62 = vector.broadcast %61 : vector<1x32xf32> to vector<8x32xf32>
      %63 = arith.addf %60, %62 : vector<8x32xf32>
      %c0_43 = arith.constant 0 : index
      %c0_44 = arith.constant 0 : index
      %c0_45 = arith.constant 0 : index
      %64 = vector.load %arg13[%c0_43, %c0_44, %c0_45] : memref<1x8x32xf32, #tpu.memory_space<vmem>>, vector<1x8x32xf32>
      %65 = vector.shape_cast %64 : vector<1x8x32xf32> to vector<8x32xf32>
      %66 = vector.shape_cast %63 : vector<8x32xf32> to vector<1x8x32xf32>
      tpu.vector_store %arg13[%c0_43, %c0_44, %c0_45], %66 {strides = array<i32>} : memref<1x8x32xf32, #tpu.memory_space<vmem>>, vector<1x8x32xf32>,
    } else {
    }
    return
  }
  func.func @transform_0(%arg0: i32, %arg1: i32, %arg2: i32) -> (i32, i32, i32) {
    %c0_i32 = arith.constant 0 : i32
    %c0_i32_0 = arith.constant 0 : i32
    return %arg0, %arg1, %c0_i32 : i32, i32, i32
  }
  func.func @transform_1(%arg0: i32, %arg1: i32, %arg2: i32) -> (i32, i32, i32) {
    %c0_i32 = arith.constant 0 : i32
    %c0_i32_0 = arith.constant 0 : i32
    return %arg0, %arg2, %c0_i32 : i32, i32, i32
  }
  func.func @transform_2(%arg0: i32, %arg1: i32, %arg2: i32) -> (i32, i32, i32) {
    %c0_i32 = arith.constant 0 : i32
    %c0_i32_0 = arith.constant 0 : i32
    %c0_i32_1 = arith.constant 0 : i32
    %c0_i32_2 = arith.constant 0 : i32
    return %c0_i32, %c0_i32_0, %c0_i32_1 : i32, i32, i32
  }
  func.func @transform_3(%arg0: i32, %arg1: i32, %arg2: i32) -> (i32, i32, i32) {
    %c0_i32 = arith.constant 0 : i32
    %c0_i32_0 = arith.constant 0 : i32
    %c0_i32_1 = arith.constant 0 : i32
    %c0_i32_2 = arith.constant 0 : i32
    return %c0_i32, %c0_i32_0, %c0_i32_1 : i32, i32, i32
  }
  func.func @transform_4(%arg0: i32, %arg1: i32, %arg2: i32) -> (i32, i32, i32) {
    %c0_i32 = arith.constant 0 : i32
    %c0_i32_0 = arith.constant 0 : i32
    %c0_i32_1 = arith.constant 0 : i32
    %c0_i32_2 = arith.constant 0 : i32
    return %c0_i32, %c0_i32_0, %c0_i32_1 : i32, i32, i32
  }
  func.func @transform_5(%arg0: i32, %arg1: i32, %arg2: i32) -> (i32, i32, i32) {
    %c0_i32 = arith.constant 0 : i32
    %c0_i32_0 = arith.constant 0 : i32
    %c0_i32_1 = arith.constant 0 : i32
    %c0_i32_2 = arith.constant 0 : i32
    return %c0_i32, %c0_i32_0, %c0_i32_1 : i32, i32, i32
  }
  func.func @transform_6(%arg0: i32, %arg1: i32, %arg2: i32) -> (i32, i32, i32) {
    %c0_i32 = arith.constant 0 : i32
    %c0_i32_0 = arith.constant 0 : i32
    %c0_i32_1 = arith.constant 0 : i32
    %c0_i32_2 = arith.constant 0 : i32
    return %c0_i32, %c0_i32_0, %c0_i32_1 : i32, i32, i32
  }
  func.func @transform_7(%arg0: i32, %arg1: i32, %arg2: i32) -> (i32, i32, i32) {
    %c0_i32 = arith.constant 0 : i32
    %c0_i32_0 = arith.constant 0 : i32
    %c0_i32_1 = arith.constant 0 : i32
    %c0_i32_2 = arith.constant 0 : i32
    return %c0_i32, %c0_i32_0, %c0_i32_1 : i32, i32, i32
  }
  func.func @transform_8(%arg0: i32, %arg1: i32, %arg2: i32) -> (i32, i32, i32) {
    %c0_i32 = arith.constant 0 : i32
    %c0_i32_0 = arith.constant 0 : i32
    %c0_i32_1 = arith.constant 0 : i32
    %c0_i32_2 = arith.constant 0 : i32
    return %c0_i32, %c0_i32_0, %c0_i32_1 : i32, i32, i32
  }
  func.func @transform_9(%arg0: i32, %arg1: i32, %arg2: i32) -> (i32, i32) {
    %c0_i32 = arith.constant 0 : i32
    %c0_i32_0 = arith.constant 0 : i32
    %c0_i32_1 = arith.constant 0 : i32
    return %c0_i32, %c0_i32_0 : i32, i32
  }
  func.func @transform_10(%arg0: i32, %arg1: i32, %arg2: i32) -> (i32, i32, i32) {
    %c0_i32 = arith.constant 0 : i32
    %c0_i32_0 = arith.constant 0 : i32
    return %arg0, %arg1, %c0_i32 : i32, i32, i32
  }
}

</mosaic_0001>

<bundles_post_ra>
// kernel: tpu_custom_call.1
= control target key start
LH: loop header
LB: loop body
LE: loop exit
PB: predicated region body
PF: predicated region fallthrough
CT: control target
= control target key end

     0   :  { %15 = vsyncpa [#allocation7], 0  ;;  %s2270_s0 = inlined_call_operand.vmem [shape: f32[2,8,32], index: 0, kind: input, shape index: {}]   ;;  %s2271_s1 = inlined_call_operand.vmem [shape: f32[2,8,32], index: 1, kind: input, shape index: {}]   ;;  %s2272_s2 = inlined_call_operand.vmem [shape: bf16[4,32,8], index: 2, kind: input, shape index: {}]   ;;  %s2273_s3 = inlined_call_operand.vmem [shape: f32[4,1,8], index: 3, kind: input, shape index: {}]   ;;  %s2274_s4 = inlined_call_operand.vmem [shape: bf16[4,32,8], index: 4, kind: input, shape index: {}]   ;;  %s2275_s5 = inlined_call_operand.vmem [shape: f32[4,1,8], index: 5, kind: input, shape index: {}]   ;;  %s2276_s6 = inlined_call_operand.vmem [shape: bf16[4,32,8], index: 6, kind: input, shape index: {}]   ;;  %s2277_s7 = inlined_call_operand.vmem [shape: f32[4,1,8], index: 7, kind: input, shape index: {}]   ;;  %s2278_s8 = inlined_call_operand.vmem [shape: bf16[4,8,32], index: 8, kind: input, shape index: {}]   ;;  %s2279_s9 = inlined_call_operand.vmem [shape: f32[1,32], index: 9, kind: input, shape index: {}]   ;;  %s2280_s10 = inlined_call_operand.hbm [shape: f32[2,8,32], index: 10, kind: output, shape index: {}]  }
   0x1   :  { %17 = vsyncpa [#allocation7 + $0x1], 0  ;;  %s1899_s13 = smov 0   ;;  %s1901_s14 = smov 0  }
   0x2   :  { %s1903_s15 = smov 0   ;;  %s1905_s16 = smov 0  }
   0x3   :  { %s1907_s17 = smov 0   ;;  %s1909_s18 = smov 0  }
   0x4 LB: > { %2283 = sst [smem:[#allocation9_spill]] %s1835_s17  ;;  %s1459_s19 = sadd.s32 4294967295, %s1839_s18   ;;  %s1839_s18 = sphi %s1909_s18, %s23_s18   ;;  %s1835_s17 = sphi %s1907_s17, %s2288_s17   ;;  %s1831_s16 = sphi %s1905_s16, %s2287_s16   ;;  %s1827_s15 = sphi %s1903_s15, %s2291_s15   ;;  %s1823_s14 = sphi %s1901_s14, %s2290_s14   ;;  %s1819_s13 = sphi %s1899_s13, %s2289_s13  }
   0x5   : > { %s1460_s20 = sadd.s32 4294967294, %s1839_s18   ;;  %s42_s21 = sadd.s32 1, %s1835_s17 }
   0x6   : > { %s275_s22 = sadd.s32 1, %s1827_s15  ;;  %p44_p0 = scmp.ge.s32.totalorder %s42_s21, 2 }
   0x7   : > { %p285_p1 = scmp.ne.s32.totalorder %s1827_s15, %s1823_s14  ;;  %p286_p2 = scmp.eq.s32.totalorder %s1459_s19, 1 }
   0x8   : > { %p291_p3 = scmp.ne.s32.totalorder %s1823_s14, %s1819_s13  ;;  %s2293_s21 = smov (%p44_p0, %s42_s21), 0 }
   0x9   : > { %2284 = sst [smem:[#allocation10_spill]] %s2293_s21  ;;  %p1939_p4 = por %p286_p2, %p285_p1 }
   0xa   : > { %p292_p5 = scmp.eq.s32.totalorder %s1460_s20, 1  ;;  %s270_s24 = ssub.s32 %s1835_s17, %s2293_s21 }
   0xb   : > { %p1463_p6 = scmp.ge.s32.totalorder %s1839_s18, 1  ;;  %p273_p7 = scmp.eq.s32.totalorder %s270_s24, 0 }
   0xc   : > { %p1946_p8 = por %p292_p5, %p291_p3  ;;  %p354_p9 = scmp.lt.s32.totalorder %s1839_s18, 3 }
   0xd   : > { %s1952_s26 = scalar_select %p273_p7, %s1827_s15, %s275_s22  }
   0xe   : > { %p355_p10 = pnand %p1463_p6, %p354_p9 }
   0xf   : > { %p401_p11 = scmp.lt.s32.totalorder (!%p355_p10), %s1831_s16, 1  ;;  %s398_s12 = sand.u32 (!%p355_p10), 1, %s1823_s14  }
  0x10   : > { %358 = sbr.rel (%p355_p10) target bundleno = 991 (0x3df), region = 60  ;;  %s1636_s22 = sshll.u32 (!%p355_p10), %s1831_s16, 3 }
  0x11   : > { %s1781_s21 = scalar_lea.hbm (!%p355_p10), %s2280_s10, 16 }
  0x15   : > { %v1640_v0 = vld [vmem:[%s2272_s2 + $0x8] sm:$0xff]  ;;  %v1639_v1 = vld [vmem:[%s2272_s2] sm:$0xff]  ;;  %v1642_v2 = vld [vmem:[%s2272_s2 + $0x18] sm:$0xff]  ;;  %s402_s19 = scalar_select %p401_p11, %s1831_s16, 1  ;;  %vm444_vm0 = vcmask 261120   ;;  %vm462_vm1 = vcmask 64512  }
  0x16   : > { %454 = vmatpush.bf16.msra.mxu0 %v1640_v0  ;;  %v1648_v3 = vld [vmem:[%s2274_s4 + $0x8] sm:$0xff]  ;;  %v1641_v4 = vld [vmem:[%s2272_s2 + $0x10] sm:$0xff]  ;;  %492 = vmatpush.bf16.msra.mxu1 %v1642_v2  ;;  %v1643_v6 = vld [vmem:[%s2272_s2 + $0x20] sm:$0xff]  ;;  %vm578_vm3 = vcmask 7168   ;;  %vm737_vm4 = vcmask 1043456   ;;  %s1354_s16 = scalar_lea.sflag [#allocation7], %s398_s12 }
  0x17   : > { %v1644_v5 = vld [vmem:[%s2272_s2 + $0x28] sm:$0xff]  ;;  %s1465_s29 = sshll.u32 %s402_s19, 3  ;;  %v1647_v8 = vld [vmem:[%s2274_s4] sm:$0xff]  ;;  %v1652_v10 = vld [vmem:[%s2274_s4 + $0x18] sm:$0xff]  ;;  %s1365_s19 = scalar_lea.hbm %s2280_s10, %s1636_s22 }
  0x18   : > { %530 = vmatpush.bf16.msra.mxu2 %v1644_v5  ;;  %s407_s20 = scalar_lea.vmem %s2270_s0, %s1465_s29  ;;  %v1651_v11 = vld [vmem:[%s2274_s4 + $0x10] sm:$0xff]  ;;  %s414_s11 = scalar_lea.vmem %s2271_s1, %s1465_s29  ;;  %v1656_v14 = vld [vmem:[%s2274_s4 + $0x28] sm:$0xff]  ;;  %v1646_v15 = vld [vmem:[%s2272_s2 + $0x38] sm:$0xff] }
  0x19   : > { %v422_v7 = vld [vmem:[%s407_s20] sm:$0xff]  ;;  %568 = vmatpush.bf16.msra.mxu3 %v1646_v15  ;;  %v1645_v17 = vld [vmem:[%s2272_s2 + $0x30] sm:$0xff]  ;;  %v1660_v18 = vld [vmem:[%s2274_s4 + $0x38] sm:$0xff]  ;;  %s1464_s20 = sshll.u32 %s398_s12, 3  ;;  %s1369_s30 = sshll.u32 %s1365_s19, 4  ;;  %s1370_s30 = int_to_ptr.hbm [resolvable:$true] %s1369_s30 }
  0x1a   : > { %455 = vmatpush.bf16.msra.mxu0 %v1639_v1  ;;  %v423_v9 = vpack.c.bf16 %v422_v7, %v422_v7  ;;  %493 = vmatpush.bf16.msra.mxu1 %v1641_v4  ;;  %v596_v12 = vld [vmem:[%s414_s11] sm:$0xff]  ;;  %v1659_v19 = vld [vmem:[%s2274_s4 + $0x30] sm:$0xff]  ;;  %s400_s27 = scalar_lea.vmem [#allocation6], %s1464_s20  ;;  %s1775_s11 = sshra.s32 %s1370_s30, 4  ;;  %s1776_s11 = int_to_ptr.hbm [resolvable:$true] %s1775_s11 }
  0x1b   : > { %v1995_v13 = vpack.c.bf16 %v596_v12, %v596_v12  ;;  %v1655_v16 = vld [vmem:[%s2274_s4 + $0x20] sm:$0xff]  ;;  %s1367_s28 = sshll.u32 %s400_s27, 4  ;;  %s1777_s22 = scalar_lea.hbm %s1776_s11, 8  ;;  %s1368_s28 = int_to_ptr.vmem [resolvable:$true] %s1367_s28 }
  0x1c   : > { %531 = vmatpush.bf16.msra.mxu2 %v1643_v6  ;;  %v1724_v20 = vld [vmem:[%s2273_s3] ss:$0 sm:$0xff]  ;;  %v1726_v21 = vld [vmem:[%s2273_s3 + $0x1] ss:$0 sm:$0xff]  ;;  %v1728_v32 = vld [vmem:[%s2273_s3 + $0x2] ss:$0 sm:$0xff]  ;;  %p1778_p12 = scmp.ne.s32.totalorder %s1776_s11, %s1777_s22  ;;  %p1782_p1 = scmp.lt.s32.totalorder %s1776_s11, %s2280_s10 }
  0x1d   : > { %1475 = vmatmul.msk.bf16.vlgmr.msra.gmra.mxu0 %vm444_vm0, %v423_v9  ;;  %1489 = vmatmul.msk.bf16.vlgmr.msra.gmra.mxu1 %vm444_vm0, %v423_v9  ;;  %v1725_v31 = vld [vmem:[%s2275_s5] ss:$0 sm:$0xff]  ;;  %v1727_v43 = vld [vmem:[%s2275_s5 + $0x1] ss:$0 sm:$0xff]  ;;  %v1730_v44 = vld [vmem:[%s2273_s3 + $0x3] ss:$0 sm:$0xff]  ;;  %p1783_p2 = scmp.lt.s32.totalorder %s1781_s21, %s1777_s22 }
  0x1e   : > { %637 = vmatpush.bf16.msrb.mxu0 %v1648_v3  ;;  %569 = vmatpush.bf16.msra.mxu3 %v1645_v17  ;;  %v1729_v56 = vld [vmem:[%s2275_s5 + $0x2] ss:$0 sm:$0xff]  ;;  %v1731_v0 = vld [vmem:[%s2275_s5 + $0x3] ss:$0 sm:$0xff]  ;;  %p1779_p13 = pnand %p1778_p12, %p1939_p4 }
  0x1f   : > { %1503 = vmatmul.msk.bf16.vlgmr.msra.gmra.mxu2 %vm444_vm0, %v423_v9  ;;  %p1784_p3 = por %p1783_p2, %p1782_p1 }
  0x20   : > { %p1780_p0 = pneg %p1779_p13 }
  0x21   : > { %1517 = vmatmul.msk.bf16.vlgmr.msra.gmra.mxu3 %vm444_vm0, %v423_v9 }
  0x22   : > { %638 = vmatpush.bf16.msrb.mxu0 %v1647_v8  ;;  %v598_v8 = vlaneseq  ;;  %p1785_p5 = pnand %p1784_p3, %p1780_p0 }
  0x24   : > { %v599_v9 = vshrl.u32 %v598_v8, 7 }
  0x26   : > { %785 = vmatpush.bf16.msra.mxu0 %v1652_v10  ;;  %v603_v10 = vand.u32 127, %v598_v8 }
  0x28   : > { %vm606_vm2 = vcmp.ge.s32.totalorder %v599_v9, %v603_v10 }
  0x2a   : > { %786 = vmatpush.bf16.msra.mxu0 %v1651_v11 }
  0x2d   : > { %1526 = vmatmul.msk.bf16.vlgmr.msrb.gmra.mxu0 %vm444_vm0, %v1995_v13 }
  0x2e   : > { %936 = vmatpush.bf16.msrb.mxu0 %v1656_v14 }
  0x32   : > { %937 = vmatpush.bf16.msrb.mxu0 %v1655_v16 }
  0x3d   : > { %1551 = vmatmul.msk.bf16.vlgmr.msra.gmra.mxu0 %vm444_vm0, %v1995_v13 }
  0x3e   : > { %1087 = vmatpush.bf16.msra.mxu0 %v1660_v18 }
  0x42   : > { %1088 = vmatpush.bf16.msra.mxu0 %v1659_v19 }
  0x4d   : > { %1581 = vmatmul.msk.bf16.vlgmr.msrb.gmra.mxu0 %vm444_vm0, %v1995_v13 }
  0x5d   : > { %1611 = vmatmul.msk.bf16.vlgmr.msra.gmra.mxu0 %vm444_vm0, %v1995_v13 }
  0x9a   : > { %v457_v22 = vpop.f32.mrf.mxu0  ;;  %v495_v24 = vpop.f32.mrf.mxu1 }
  0x9b   : > { %v458_v23 = vadd.f32 %v1724_v20, %v457_v22  ;;  %v496_v25 = vadd.f32 %v1726_v21, %v495_v24  ;;  %v1650_v20 = vld [vmem:[%s2276_s6 + $0x8] sm:$0xff]  ;;  %v1841_v21 = vmov -1e+30   ;;  %v1649_v22 = vld [vmem:[%s2276_s6] sm:$0xff] }
  0x9c   : > { %579 = vst.msk [vmem:[#allocation3] sm:$0xff] %vm578_vm3, %v1841_v21  ;;  %670 = vmatpush.bf16.msrb.mxu1 %v1650_v20 }
  0x9d   : > { %v461_v26 = vmul.f32 0.35355338, %v458_v23  ;;  %v499_v27 = vmul.f32 0.35355338, %v496_v25  ;;  %580 = vst.msk [vmem:[#allocation3 + $0x8] sm:$0xff] %vm578_vm3, %v1841_v21 }
  0x9e   : > { %581 = vst.msk [vmem:[#allocation3 + $0x10] sm:$0xff] %vm578_vm3, %v1841_v21 }
  0x9f   : > { %463 = vst.msk [vmem:[#allocation2] sm:$0xff] %vm462_vm1, %v461_v26 }
  0xa0   : > { %501 = vst.msk [vmem:[#allocation2 + $0x8] sm:$0xff] %vm462_vm1, %v499_v27  ;;  %671 = vmatpush.bf16.msrb.mxu1 %v1649_v22 }
  0xa1   : > { %582 = vst.msk [vmem:[#allocation3 + $0x18] sm:$0xff] %vm578_vm3, %v1841_v21 }
  0xa2   : > { %v459_v28 = vpop.f32.mrf.mxu0  ;;  %v533_v29 = vpop.f32.mrf.mxu2 }
  0xa3   : > { %v497_v30 = vpop.f32.mrf.mxu1  ;;  %v534_v33 = vadd.f32 %v1728_v32, %v533_v29  ;;  %1535 = vmatmul.msk.bf16.vlgmr.msrb.gmra.mxu1 %vm444_vm0, %v1995_v13  ;;  %v1654_v32 = vld [vmem:[%s2276_s6 + $0x18] sm:$0xff] }
  0xa4   : > { %v571_v45 = vpop.f32.mrf.mxu3  ;;  %820 = vmatpush.bf16.msra.mxu1 %v1654_v32 }
  0xa5   : > { %v537_v37 = vmul.f32 0.35355338, %v534_v33  ;;  %v572_v46 = vadd.f32 %v1730_v44, %v571_v45  ;;  %v1843_v33 = vmov 0.0  }
  0xa6   : > { %v677_v41 = vld [vmem:[#allocation2] sm:$0xff]  ;;  %583 = vst.msk [vmem:[#allocation4] sm:$0xff] %vm578_vm3, %v1843_v33 }
  0xa7   : > { %539 = vst.msk [vmem:[#allocation2 + $0x10] sm:$0xff] %vm462_vm1, %v537_v37  ;;  %v678_v42 = vpack.c.bf16 %v677_v41, %v677_v41  ;;  %v575_v49 = vmul.f32 0.35355338, %v572_v46  ;;  %v828_v52 = vld [vmem:[#allocation2 + $0x8] sm:$0xff]  ;;  %v2116_v37 = vld [vmem:[#allocation3] sm:$0xff]  ;;  %v1662_v41 = vld [vmem:[%s2276_s6 + $0x38] sm:$0xff] }
  0xa8   : > { %v829_v55 = vpack.c.bf16 %v828_v52, %v828_v52  ;;  %584 = vst.msk [vmem:[#allocation4 + $0x8] sm:$0xff] %vm578_vm3, %v1843_v33 }
  0xa9   : > { %577 = vst.msk [vmem:[#allocation2 + $0x18] sm:$0xff] %vm462_vm1, %v575_v49 }
  0xaa   : > { %v640_v34 = vpop.f32.mrf.mxu0  ;;  %v535_v35 = vpop.f32.mrf.mxu2  ;;  %585 = vst.msk [vmem:[#allocation4 + $0x10] sm:$0xff] %vm578_vm3, %v1843_v33 }
  0xab   : > { %v641_v36 = vadd.f32 %v1725_v31, %v640_v34  ;;  %v1842_v31 = vmov 0   ;;  %v1653_v34 = vld [vmem:[%s2276_s6 + $0x10] sm:$0xff]  ;;  %586 = vst.msk [vmem:[#allocation4 + $0x18] sm:$0xff] %vm578_vm3, %v1843_v33  ;;  %v1658_v35 = vld [vmem:[%s2276_s6 + $0x28] sm:$0xff] }
  0xac   : > { %v573_v53 = vpop.f32.mrf.mxu3  ;;  %1721 = vset.pattern.permute.xlu1 %v1842_v31  ;;  %1722 = vset.pattern.permute.xlu2 %v1842_v31  ;;  %587 = vst.msk [vmem:[#allocation5] sm:$0xff] %vm462_vm1, %v1843_v33 }
  0xad   : > { %v679_v38 = vpack.c.bf16 %v641_v36, %v641_v36  ;;  %1723 = vset.pattern.permute.xlu0 %v1842_v31  ;;  %821 = vmatpush.bf16.msra.mxu1 %v1653_v34  ;;  %588 = vst.msk [vmem:[#allocation5 + $0x8] sm:$0xff] %vm462_vm1, %v1843_v33  ;;  %v1657_v36 = vld [vmem:[%s2276_s6 + $0x20] sm:$0xff] }
  0xae   : > { %v979_v61 = vld [vmem:[#allocation2 + $0x10] sm:$0xff]  ;;  %589 = vst.msk [vmem:[#allocation5 + $0x10] sm:$0xff] %vm462_vm1, %v1843_v33 }
  0xaf   : > { %v685_v39 = vsel %vm462_vm1, %v679_v38, 0  ;;  %v980_v63 = vpack.c.bf16 %v979_v61, %v979_v61  ;;  %590 = vst.msk [vmem:[#allocation5 + $0x18] sm:$0xff] %vm462_vm1, %v1843_v33 }
  0xb0   : > { %694 = vmatpush.bf16.xpose.msrb.mxu2 %v685_v39  ;;  %v1130_v5 = vld [vmem:[#allocation2 + $0x18] sm:$0xff] }
  0xb1   : > { %v1131_v7 = vpack.c.bf16 %v1130_v5, %v1130_v5  ;;  %971 = vmatpush.bf16.msrb.mxu1 %v1658_v35  ;;  %v1734_v5 = vld [vmem:[%s2277_s7 + $0x2] ss:$0 sm:$0xff] }
  0xb2   : > { %v642_v40 = vpop.f32.mrf.mxu0 }
  0xb3   : > { %1565 = vmatmul.msk.bf16.vlgmr.msra.gmra.mxu1 %vm444_vm0, %v1995_v13 }
  0xb5   : > { %972 = vmatpush.bf16.msrb.mxu1 %v1657_v36 }
  0xb7   : > { %1536 = vmatmul.msk.bf16.vlgmr.msrb.gmra.mxu2 %vm462_vm1, %v678_v42  ;;  %v1661_v42 = vld [vmem:[%s2276_s6 + $0x30] sm:$0xff] }
  0xb9   : > { %1122 = vmatpush.bf16.msra.mxu1 %v1662_v41 }
  0xba   : > { %v788_v47 = vpop.f32.mrf.mxu0 }
  0xbb   : > { %v789_v48 = vadd.f32 %v1727_v43, %v788_v47  ;;  %v2134_v43 = vld [vmem:[#allocation3 + $0x8] sm:$0xff]  ;;  %v2144_v47 = vld [vmem:[#allocation3 + $0x10] sm:$0xff] }
  0xbd   : > { %v830_v50 = vpack.c.bf16 %v789_v48, %v789_v48  ;;  %1123 = vmatpush.bf16.msra.mxu1 %v1661_v42 }
  0xbf   : > { %v835_v51 = vsel %vm462_vm1, %v830_v50, 0  ;;  %v2154_v50 = vld [vmem:[#allocation3 + $0x18] sm:$0xff] }
  0xc0   : > { %844 = vmatpush.bf16.xpose.msra.mxu2 %v835_v51 }
  0xc2   : > { %v790_v54 = vpop.f32.mrf.mxu0 }
  0xc3   : > { %1595 = vmatmul.msk.bf16.vlgmr.msrb.gmra.mxu1 %vm444_vm0, %v1995_v13  ;;  %v1732_v54 = vld [vmem:[%s2277_s7] ss:$0 sm:$0xff] }
  0xc7   : > { %1566 = vmatmul.msk.bf16.vlgmr.msra.gmra.mxu2 %vm462_vm1, %v829_v55 }
  0xca   : > { %v939_v57 = vpop.f32.mrf.mxu0 }
  0xcb   : > { %v940_v58 = vadd.f32 %v1729_v56, %v939_v57 }
  0xcd   : > { %v981_v59 = vpack.c.bf16 %v940_v58, %v940_v58 }
  0xcf   : > { %v986_v60 = vsel %vm462_vm1, %v981_v59, 0 }
  0xd0   : > { %995 = vmatpush.bf16.xpose.msrb.mxu2 %v986_v60  ;;  %v1733_v60 = vld [vmem:[%s2277_s7 + $0x1] ss:$0 sm:$0xff] }
  0xd2   : > { %v941_v62 = vpop.f32.mrf.mxu0 }
  0xd3   : > { %1625 = vmatmul.msk.bf16.vlgmr.msra.gmra.mxu1 %vm444_vm0, %v1995_v13 }
  0xd7   : > { %1596 = vmatmul.msk.bf16.vlgmr.msrb.gmra.mxu2 %vm462_vm1, %v980_v63 }
  0xda   : > { %v1090_v1 = vpop.f32.mrf.mxu0 }
  0xdb   : > { %v1091_v2 = vadd.f32 %v1731_v0, %v1090_v1 }
  0xdd   : > { %v1132_v3 = vpack.c.bf16 %v1091_v2, %v1091_v2 }
  0xdf   : > { %v1137_v4 = vsel %vm462_vm1, %v1132_v3, 0 }
  0xe0   : > { %1146 = vmatpush.bf16.xpose.msra.mxu2 %v1137_v4 }
  0xe2   : > { %v1092_v6 = vpop.f32.mrf.mxu0 }
  0xe7   : > { %1626 = vmatmul.msk.bf16.vlgmr.msra.gmra.mxu2 %vm462_vm1, %v1131_v7 }
 0x120   : > { %v673_v55 = vpop.f32.mrf.mxu1 }
 0x121   : > { %v674_v56 = vadd.f32 %v1732_v54, %v673_v55 }
 0x123   : > { %v733_v57 = vpack.c.bf16 %v674_v56, %v674_v56 }
 0x125   : > { %v739_v58 = vsel %vm737_vm4, %v733_v57, 0  ;;  %v1171_v57 = vld [vmem:[#allocation4 + $0x18] sm:$0xff] }
 0x126   : > { %748 = vmatpush.bf16.msrb.mxu3 %v739_v58 }
 0x128   : > { %v675_v59 = vpop.f32.mrf.mxu1 }
 0x130   : > { %v823_v61 = vpop.f32.mrf.mxu1 }
 0x131   : > { %v824_v62 = vadd.f32 %v1733_v60, %v823_v61  ;;  %v1020_v60 = vld [vmem:[#allocation4 + $0x10] sm:$0xff] }
 0x133   : > { %v885_v63 = vpack.c.bf16 %v824_v62, %v824_v62 }
 0x135   : > { %v890_v0 = vsel %vm737_vm4, %v885_v63, 0 }
 0x136   : > { %899 = vmatpush.bf16.msra.mxu3 %v890_v0 }
 0x138   : > { %v825_v1 = vpop.f32.mrf.mxu1 }
 0x13a   : > { %v696_v11 = vpop.f32.mrf.mxu2 }
 0x13b   : > { %v2061_v12 = vsel %vm606_vm2, %v696_v11, -1e+30 }
 0x13c   : > { %v702_v14 = vsel %vm462_vm1, %v2061_v12, -inf }
 0x13d   : > { %703 = vmax.xlane.f32.xlu0 %v702_v14 }
 0x140   : > { %v974_v6 = vpop.f32.mrf.mxu1 }
 0x141   : > { %v975_v7 = vadd.f32 %v1734_v5, %v974_v6 }
 0x142   : > { %v698_v15 = vpop.f32.mrf.mxu2 }
 0x143   : > { %v1036_v9 = vpack.c.bf16 %v975_v7, %v975_v7 }
 0x14a   : > { %v846_v16 = vpop.f32.mrf.mxu2 }
 0x14b   : > { %v2066_v17 = vsel %vm606_vm2, %v846_v16, -1e+30  ;;  %v1041_v16 = vsel %vm737_vm4, %v1036_v9, 0 }
 0x14c   : > { %v853_v18 = vsel %vm462_vm1, %v2066_v17, -inf }
 0x14d   : > { %854 = vmax.xlane.f32.xlu0 %v853_v18 }
 0x152   : > { %v848_v19 = vpop.f32.mrf.mxu2 }
 0x153   : > { %v1735_v19 = vld [vmem:[%s2277_s7 + $0x3] ss:$0 sm:$0xff] }
 0x15a   : > { %v997_v23 = vpop.f32.mrf.mxu2 }
 0x15b   : > { %v2081_v24 = vsel %vm606_vm2, %v997_v23, -1e+30 }
 0x15c   : > { %v1004_v25 = vsel %vm462_vm1, %v2081_v24, -inf }
 0x15d   : > { %1005 = vmax.xlane.f32.xlu1 %v1004_v25 }
 0x162   : > { %v999_v26 = vpop.f32.mrf.mxu2 }
 0x16a   : > { %v1148_v27 = vpop.f32.mrf.mxu2 }
 0x16b   : > { %v2088_v28 = vsel %vm606_vm2, %v1148_v27, -1e+30 }
 0x16c   : > { %v1155_v29 = vsel %vm462_vm1, %v2088_v28, -inf }
 0x16d   : > { %1156 = vmax.xlane.f32.xlu2 %v1155_v29 }
 0x172   : > { %v1150_v30 = vpop.f32.mrf.mxu2 }
 0x1b0   : > { %v704_v38 = vpop.xlane.xlu0 %703 }
 0x1b1   : > { %v2119_v39 = vmax.f32 %v2116_v37, %v704_v38 }
 0x1b3   : > { %v706_v40 = vsub.f32 %v2116_v37, %v2119_v39  ;;  %756 = vst.msk [vmem:[#allocation3] sm:$0xff] %vm578_vm3, %v2119_v39  ;;  %711 = vperm.xlu1 %1721, %v2119_v39  }
 0x1b5   : > { %v707_v21 = vmul.f32 1.442695, %v706_v40 }
 0x1c0   : > { %v855_v44 = vpop.xlane.xlu0 %854 }
 0x1c1   : > { %v2137_v45 = vmax.f32 %v2134_v43, %v855_v44 }
 0x1c3   : > { %v857_v46 = vsub.f32 %v2134_v43, %v2137_v45  ;;  %907 = vst.msk [vmem:[#allocation3 + $0x8] sm:$0xff] %vm578_vm3, %v2137_v45  ;;  %862 = vperm.xlu2 %1722, %v2137_v45  }
 0x1c5   : > { %v858_v41 = vmul.f32 1.442695, %v857_v46  ;;  %v725_v46 = vld [vmem:[#allocation5] sm:$0xff] }
 0x1d0   : > { %v1006_v48 = vpop.xlane.xlu1 %1005 }
 0x1d1   : > { %v2147_v49 = vmax.f32 %v2144_v47, %v1006_v48 }
 0x1d3   : > { %v1008_v13 = vsub.f32 %v2144_v47, %v2147_v49  ;;  %1058 = vst.msk [vmem:[#allocation3 + $0x10] sm:$0xff] %vm578_vm3, %v2147_v49  ;;  %1013 = vperm.xlu0 %1723, %v2147_v49  }
 0x1d5   : > { %v1009_v40 = vmul.f32 1.442695, %v1008_v13  ;;  %v717_v13 = vld [vmem:[#allocation4] sm:$0xff] }
 0x1e0   : > { %v1157_v51 = vpop.xlane.xlu2 %1156 }
 0x1e1   : > { %v2157_v52 = vmax.f32 %v2154_v50, %v1157_v51 }
 0x1e3   : > { %v1159_v53 = vsub.f32 %v2154_v50, %v2157_v52  ;;  %1209 = vst.msk [vmem:[#allocation3 + $0x18] sm:$0xff] %vm578_vm3, %v2157_v52  ;;  %1164 = vperm.xlu2 %1722, %v2157_v52  }
 0x1e5   : > { %v1160_v48 = vmul.f32 1.442695, %v1159_v53 }
 0x21d   : > { %v863_v8 = vpop.permute.xlu2 %862 }
 0x21e   : > { %v865_v11 = vsub.f32 %v2066_v17, %v863_v8 }
 0x220   : > { %v866_v18 = vmul.f32 1.442695, %v865_v11 }
 0x225   : > { %v712_v2 = vpop.permute.xlu1 %711 }
 0x226   : > { %v714_v3 = vsub.f32 %v2061_v12, %v712_v2  ;;  %v976_v12 = vpop.f32.mrf.mxu1 }
 0x228   : > { %v715_v4 = vmul.f32 1.442695, %v714_v3  ;;  %v869_v3 = vld [vmem:[#allocation4 + $0x8] sm:$0xff] }
 0x22a   : > { %1737 = vpow2.f32 %v715_v4  ;;  %v877_v4 = vld [vmem:[#allocation5 + $0x8] sm:$0xff] }
 0x22b   : > { %1739 = vpow2.f32 %v866_v18 }
 0x22c   : > { %1741 = vpow2.f32 %v707_v21 }
 0x22e   : > { %v1125_v20 = vpop.f32.mrf.mxu1 }
 0x22f   : > { %v1126_v22 = vadd.f32 %v1735_v19, %v1125_v20 }
 0x230   : > { %v1738_v10 = vpop.eup %1737 }
 0x231   : > { %v719_v14 = vsel %vm462_vm1, %v1738_v10, 0.0  ;;  %v732_v15 = vpack.c.bf16 %v1738_v10, %v1738_v10  ;;  %v1187_v23 = vpack.c.bf16 %v1126_v22, %v1126_v22  ;;  %v1740_v25 = vpop.eup %1739 }
 0x232   : > { %720 = vadd.xlane.f32.xlu0 %v719_v14  ;;  %v884_v29 = vpack.c.bf16 %v1740_v25, %v1740_v25  ;;  %v1742_v32 = vpop.eup %1741 }
 0x233   : > { %1537 = vmatmul.msk.bf16.vlgmr.msrb.gmra.mxu3 %vm462_vm1, %v732_v15  ;;  %v1192_v30 = vsel %vm737_vm4, %v1187_v23, 0  ;;  %v718_v51 = vmul.f32 %v1742_v32, %v717_v13 }
 0x234   : > { %1050 = vmatpush.bf16.msrb.mxu3 %v1041_v16  ;;  %v1028_v16 = vld [vmem:[#allocation5 + $0x10] sm:$0xff] }
 0x236   : > { %v1127_v31 = vpop.f32.mrf.mxu1 }
 0x23d   : > { %v1165_v17 = vpop.permute.xlu2 %1164 }
 0x23e   : > { %v1167_v26 = vsub.f32 %v2088_v28, %v1165_v17 }
 0x240   : > { %v1168_v27 = vmul.f32 1.442695, %v1167_v26  ;;  %v1179_v26 = vld [vmem:[#allocation5 + $0x18] sm:$0xff] }
 0x242   : > { %1743 = vpow2.f32 %v1168_v27 }
 0x243   : > { %1567 = vmatmul.msk.bf16.vlgmr.msra.gmra.mxu3 %vm462_vm1, %v884_v29 }
 0x244   : > { %1201 = vmatpush.bf16.msra.mxu3 %v1192_v30 }
 0x245   : > { %v1014_v33 = vpop.permute.xlu0 %1013 }
 0x246   : > { %v1016_v34 = vsub.f32 %v2081_v24, %v1014_v33  ;;  %728 = vperm.xlu0 %1723, %v1742_v32   ;;  %v871_v24 = vsel %vm462_vm1, %v1740_v25, 0.0  ;;  %v1633_v33 = vld [vmem:[%s2278_s8 + $0xc] sm:$0xf] }
 0x248   : > { %v1744_v35 = vpop.eup %1743  ;;  %v1017_v36 = vmul.f32 1.442695, %v1016_v34  ;;  %v1330_v34 = vsel %vm737_vm4, %v1633_v33, 0 }
 0x249   : > { %v1173_v37 = vsel %vm462_vm1, %v1744_v35, 0.0  ;;  %v1186_v44 = vpack.c.bf16 %v1744_v35, %v1744_v35 }
 0x24a   : > { %1745 = vpow2.f32 %v1017_v36  ;;  %1174 = vadd.xlane.f32.xlu2 %v1173_v37  ;;  %v1631_v37 = vld [vmem:[%s2278_s8 + $0x8] sm:$0xf] }
 0x24b   : > { %1747 = vpow2.f32 %v1009_v40  ;;  %v1628_v40 = vld [vmem:[%s2278_s8 + $0x4] sm:$0xf] }
 0x24c   : > { %1749 = vpow2.f32 %v858_v41  ;;  %v1244_v41 = vsel %vm737_vm4, %v1628_v40, 0 }
 0x24d   : > { %1751 = vpow2.f32 %v1160_v48  ;;  %1253 = vmatpush.bf16.msrb.mxu0 %v1244_v41 }
 0x250   : > { %v1746_v28 = vpop.eup %1745 }
 0x251   : > { %v1035_v38 = vpack.c.bf16 %v1746_v28, %v1746_v28  ;;  %v1022_v39 = vsel %vm462_vm1, %v1746_v28, 0.0  ;;  %v1748_v42 = vpop.eup %1747 }
 0x252   : > { %1023 = vadd.xlane.f32.xlu1 %v1022_v39  ;;  %v1750_v47 = vpop.eup %1749  ;;  %v1021_v61 = vmul.f32 %v1748_v42, %v1020_v60 }
 0x253   : > { %1597 = vmatmul.msk.bf16.vlgmr.msrb.gmra.mxu3 %vm462_vm1, %v1035_v38  ;;  %v1752_v49 = vpop.eup %1751  ;;  %v870_v5 = vmul.f32 %v1750_v47, %v869_v3  ;;  %v1296_v38 = vsel %vm737_vm4, %v1631_v37, 0 }
 0x254   : > { %v1172_v59 = vmul.f32 %v1752_v49, %v1171_v57  ;;  %1339 = vmatpush.bf16.msrb.mxu3 %v1330_v34  ;;  %1305 = vmatpush.bf16.msrb.mxu2 %v1296_v38 }
 0x25a   : > { %872 = vadd.xlane.f32.xlu1 %v871_v24  ;;  %v1223_v24 = vld [vmem:[%s2278_s8] sm:$0xf] }
 0x262   : > { %1031 = vperm.xlu2 %1722, %v1748_v42   ;;  %v1263_v42 = vsel %vm737_vm4, %v1223_v24, 0 }
 0x263   : > { %1627 = vmatmul.msk.bf16.vlgmr.msra.gmra.mxu3 %vm462_vm1, %v1186_v44  ;;  %1272 = vmatpush.bf16.msrb.mxu1 %v1263_v42 }
 0x26a   : > { %880 = vperm.xlu2 %1722, %v1750_v47  }
 0x273   : > { %1182 = vperm.xlu1 %1721, %v1752_v49  }
 0x2a5   : > { %v721_v54 = vpop.xlane.xlu0 %720 }
 0x2a6   : > { %v722_v43 = vadd.f32 %v721_v54, %v718_v51 }
 0x2a8   : > { %724 = vst.msk [vmem:[#allocation4] sm:$0xff] %vm578_vm3, %v722_v43 }
 0x2af   : > { %v1214_v12 = vld [vmem:[#allocation4] sm:$0xff] }
 0x2b6   : > { %v750_v45 = vpop.f32.mrf.mxu3 }
 0x2b8   : > { %v729_v55 = vpop.permute.xlu0 %728 }
 0x2b9   : > { %v731_v56 = vmul.f32 %v729_v55, %v725_v46 }
 0x2bb   : > { %v754_v58 = vadd.f32 %v750_v45, %v731_v56 }
 0x2bd   : > { %755 = vst.msk [vmem:[#allocation5] sm:$0xff] %vm462_vm1, %v754_v58  ;;  %v1175_v50 = vpop.xlane.xlu2 %1174 }
 0x2be   : > { %v1176_v52 = vadd.f32 %v1175_v50, %v1172_v59  ;;  %v752_v53 = vpop.f32.mrf.mxu3 }
 0x2c0   : > { %1177 = vst.msk [vmem:[#allocation4 + $0x18] sm:$0xff] %vm578_vm3, %v1176_v52 }
 0x2c4   : > { %v1213_v54 = vld [vmem:[#allocation5] sm:$0xff] }
 0x2c5   : > { %v1024_v62 = vpop.xlane.xlu1 %1023  ;;  %v1032_v63 = vpop.permute.xlu2 %1031 }
 0x2c6   : > { %v1025_v0 = vadd.f32 %v1024_v62, %v1021_v61  ;;  %v901_v1 = vpop.f32.mrf.mxu3  ;;  %v1034_v18 = vmul.f32 %v1032_v63, %v1028_v16  ;;  %v1736_v61 = vld [vmem:[%s2279_s9] ss:$0 sm:$0xff] }
 0x2c7   : > { %v1315_v2 = vld [vmem:[#allocation4 + $0x18] sm:$0xff] }
 0x2c8   : > { %1026 = vst.msk [vmem:[#allocation4 + $0x10] sm:$0xff] %vm578_vm3, %v1025_v0  ;;  %1753 = vrcp.f32 %v1315_v2 }
 0x2cd   : > { %v873_v6 = vpop.xlane.xlu1 %872  ;;  %v881_v7 = vpop.permute.xlu2 %880 }
 0x2ce   : > { %v1754_v8 = vpop.eup %1753  ;;  %v874_v9 = vadd.f32 %v873_v6, %v870_v5  ;;  %v883_v10 = vmul.f32 %v881_v7, %v877_v4  ;;  %v903_v11 = vpop.f32.mrf.mxu3 }
 0x2cf   : > { %1319 = vperm.xlu2 %1722, %v1754_v8   ;;  %v1281_v14 = vld [vmem:[#allocation4 + $0x10] sm:$0xff] }
 0x2d0   : > { %875 = vst.msk [vmem:[#allocation4 + $0x8] sm:$0xff] %vm578_vm3, %v874_v9  ;;  %v905_v15 = vadd.f32 %v901_v1, %v883_v10  ;;  %1755 = vrcp.f32 %v1281_v14 }
 0x2d1   : > { %1757 = vrcp.f32 %v1214_v12 }
 0x2d2   : > { %906 = vst.msk [vmem:[#allocation5 + $0x8] sm:$0xff] %vm462_vm1, %v905_v15 }
 0x2d6   : > { %v1756_v19 = vpop.eup %1755  ;;  %v1052_v20 = vpop.f32.mrf.mxu3 }
 0x2d7   : > { %v1056_v21 = vadd.f32 %v1052_v20, %v1034_v18  ;;  %1285 = vperm.xlu1 %1721, %v1756_v19   ;;  %v1227_v22 = vld [vmem:[#allocation4 + $0x8] sm:$0xff]  ;;  %v1758_v17 = vpop.eup %1757 }
 0x2d8   : > { %1759 = vrcp.f32 %v1227_v22 }
 0x2d9   : > { %1057 = vst.msk [vmem:[#allocation5 + $0x10] sm:$0xff] %vm462_vm1, %v1056_v21  ;;  %v1225_v51 = vld [vmem:[#allocation5 + $0x8] sm:$0xff] }
 0x2de   : > { %v1760_v23 = vpop.eup %1759  ;;  %v1054_v25 = vpop.f32.mrf.mxu3 }
 0x2df   : > { %1218 = vperm.xlu1 %1721, %v1758_v17   ;;  %1231 = vperm.xlu0 %1723, %v1760_v23  }
 0x2e0   : > { %v1279_v48 = vld [vmem:[#allocation5 + $0x10] sm:$0xff] }
 0x2e5   : > { %v1183_v27 = vpop.permute.xlu1 %1182 }
 0x2e6   : > { %v1185_v29 = vmul.f32 %v1183_v27, %v1179_v26  ;;  %v1203_v30 = vpop.f32.mrf.mxu3 }
 0x2e8   : > { %v1207_v31 = vadd.f32 %v1203_v30, %v1185_v29 }
 0x2ea   : > { %1208 = vst.msk [vmem:[#allocation5 + $0x18] sm:$0xff] %vm462_vm1, %v1207_v31 }
 0x2ee   : > { %v1205_v32 = vpop.f32.mrf.mxu3 }
 0x2f1   : > { %v1313_v35 = vld [vmem:[#allocation5 + $0x18] sm:$0xff] }
 0x329   : > { %v1320_v36 = vpop.permute.xlu2 %1319 }
 0x32a   : > { %v1322_v28 = vmul.f32 %v1320_v36, %v1313_v35 }
 0x32c   : > { %v1323_v39 = vpack.c.bf16 %v1322_v28, %v1322_v28 }
 0x32e   : > { %1634 = vmatmul.msk.bf16.vlgmr.msrb.gmra.mxu3 %vm462_vm1, %v1323_v39 }
 0x349   : > { %v1286_v44 = vpop.permute.xlu1 %1285 }
 0x34a   : > { %v1288_v47 = vmul.f32 %v1286_v44, %v1279_v48 }
 0x34c   : > { %v1289_v49 = vpack.c.bf16 %v1288_v47, %v1288_v47 }
 0x34e   : > { %1632 = vmatmul.msk.bf16.vlgmr.msrb.gmra.mxu2 %vm462_vm1, %v1289_v49 }
 0x351   : > { %v1232_v13 = vpop.permute.xlu0 %1231  ;;  %v1219_v43 = vpop.permute.xlu1 %1218 }
 0x352   : > { %v1234_v45 = vmul.f32 %v1232_v13, %v1225_v51  ;;  %v1221_v46 = vmul.f32 %v1219_v43, %v1213_v54 }
 0x354   : > { %v1235_v55 = vpack.c.bf16 %v1234_v45, %v1234_v45  ;;  %v1222_v56 = vpack.c.bf16 %v1221_v46, %v1221_v46 }
 0x356   : > { %1629 = vmatmul.msk.bf16.vlgmr.msrb.gmra.mxu0 %vm462_vm1, %v1235_v55  ;;  %1630 = vmatmul.msk.bf16.vlgmr.msrb.gmra.mxu1 %vm462_vm1, %v1222_v56 }
 0x3b1   : > { %v1341_v57 = vpop.f32.mrf.mxu3 }
 0x3b9   : > { %v1343_v58 = vpop.f32.mrf.mxu3 }
 0x3d1   : > { %v1307_v59 = vpop.f32.mrf.mxu2 }
 0x3d3   : > { %v1255_v50 = vpop.f32.mrf.mxu0  ;;  %v1274_v52 = vpop.f32.mrf.mxu1 }
 0x3d4   : > { %v1275_v53 = vadd.f32 %v1274_v52, %v1255_v50 }
 0x3d6   : > { %v1311_v60 = vadd.f32 %v1307_v59, %v1275_v53 }
 0x3d8   : > { %v1345_v62 = vadd.f32 %v1341_v57, %v1311_v60 }
 0x3d9   : > { %v1309_v63 = vpop.f32.mrf.mxu2 }
 0x3da   : > { %v1350_v0 = vadd.f32 %v1736_v61, %v1345_v62 }
 0x3db   : > { %v1257_v1 = vpop.f32.mrf.mxu0  ;;  %v1276_v2 = vpop.f32.mrf.mxu1 }
 0x3dc   : > { %1352 = vst.msk [vmem:[%s400_s27] sm:$0xff] %vm444_vm0, %v1350_v0 }
 0x3dd   : > { %1788 = shalt.err (!%p1785_p5)
}
 0x3de   : > { %1663 = dma.vmem_to_hbm [thread:$0]  (%p1939_p4), %s1368_s28, 128, %s1370_s30, %s1354_s16  }
 0x3df PF: > { %p1669_p6 = scmp.ge.s32.totalorder %s1839_s18, 2  ;;  %s1381_s12 = sand.u32 1, %s1819_s13  }
 0x3e0   : > { %s1382_s17 = scalar_lea.sflag [#allocation7], %s1381_s12 }
 0x3e1   : > { %p1666_p7 = pnand %p1669_p6, %p1946_p8 }
 0x3e3   : > { %p1667_p9 = pneg %p1666_p7 }
 0x3e5   : > { %1814 = dma.done.wait (%p1667_p9), %s1382_s17, 128  }
 0x3e6   : > { %1816 = vsyncadd (%p1667_p9), %s1382_s17, 4294967168  ;;  %s23_s18 = sadd.s32 1, %s1839_s18   ;;  %s2287_s16 = sld [smem:[#allocation9_spill]] }
 0x3e7   : > { %p20_p10 = scmp.ge.s32.totalorder %s23_s18, 4   ;;  %s2288_s17 = sld [smem:[#allocation10_spill]] }
 0x3e8   : > { %s2289_s13 = smov %s1823_s14  ;;  %s2290_s14 = smov %s1827_s15 }
 0x3e9   : > { %s2291_s15 = smov %s1952_s26  ;;  %22 = sbr.rel (!%p20_p10) target bundleno = 4 (0x4), region = 152 }
 0x3ee   :  { %1388 = vsyncpa [#allocation7], 1 }
 0x3ef   :  { %1390 = vsyncpa [#allocation7 + $0x1], 1 }

</bundles_post_ra>
